<compile_context>
chip_gen: v5e
topology: v5e:2x2
jax: 0.10.0
libtpu: 0.0.40
codegen_flags: <defaults>
</compile_context>

<pallas_src>
import numpy as np
import jax
import jax.numpy as jnp
from jax import lax
from jax.experimental import pallas as pl
from jax.experimental.pallas import tpu as pltpu

# ---------------- small synthetic sizes (stand-ins for resnet34 / mem_size=512 / 61 classes) ---
T = 3                 # sequence length (inputVariable.size(0))
B = 2                 # batch (inputVariable.size(1))
IMG = 56              # frame size -> 8x8 stride-8 stand-in conv gives 7x7 features
FEAT_C = 64           # stands for the 512 resnet34 feature channels
MEM = 32              # stands for mem_size=512
N_CLASSES = 10        # stands for num_classes=61
N_RES_CLASSES = 16    # stands for the 1000-way resnet fc (rows of weight_softmax)
HH = WW = 7
HW = HH * WW          # 49


# ------------------------------------------------------------------ shift selectors for 3x3 conv
def make_shift_matrices(hh=HH, ww=WW):
    """T[k, p, q] = 1 iff input location q feeds output location p for tap k (zero-padded 3x3).
    Tap order k = 3*(dy+1) + (dx+1), matching wx.reshape(4*MEM, C, 9)."""
    mats = np.zeros((9, hh * ww, hh * ww), np.float32)
    k = 0
    for dy in (-1, 0, 1):
        for dx in (-1, 0, 1):
            for y in range(hh):
                for x in range(ww):
                    yy, xx = y + dy, x + dx
                    if 0 <= yy < hh and 0 <= xx < ww:
                        mats[k, y * ww + x, yy * ww + xx] = 1.0
            k += 1
    return jnp.asarray(mats)


# ------------------------------------------------------------------ fused recurrent Pallas kernel
def convlstm_seq_kernel(wcls_ref, fconv_ref, fnbn_ref, tshift_ref, wbig_ref,
                        bias_ref, fcw_ref, fcb_ref,
                        feats_ref, logits_ref, h_sc, c_sc):
    """One (batch b, timestep t) grid step: CAM spatial attention + MyConvLSTMCell.

    Block shapes seen by the kernel:
      wcls: (1,1,1,C)   fconv/fnbn: (1,1,49,C)   tshift: (9,49,49) bf16
      wbig: (9*(C+MEM), 4*MEM) bf16   bias: (1,4*MEM)   fcw: (MEM,NCLS)   fcb: (1,NCLS)
      feats out: (1,1,MEM)   logits out: (1,1,NCLS)   h/c scratch: (49, MEM) f32
    """
    t = pl.program_id(1)
    hw, mem = h_sc.shape

    @pl.when(t == 0)
    def _init():                                # new batch element -> zero recurrent state
        h_sc[...] = jnp.zeros_like(h_sc)
        c_sc[...] = jnp.zeros_like(c_sc)

    fconv = fconv_ref[0, 0]                     # (49, C)
    fnbn = fnbn_ref[0, 0]                       # (49, C)
    wcls = wcls_ref[0, 0]                       # (1, C) == weight_softmax[class_idx]

    # ---- CAM spatial attention: cam[p] = <w_cls, fconv[:, p]>, softmax over the 49 positions ----
    cam = jnp.sum(fconv * wcls, axis=-1, keepdims=True)                # (49, 1), lane reduce
    cam = cam - jnp.max(cam, axis=0, keepdims=True)
    e = jnp.exp(cam)
    att = e * pl.reciprocal(jnp.sum(e, axis=0, keepdims=True), approx=True)
    attfeat = fnbn * att                                               # (49, C)  feature_convNBN * attMAP

    # ---- MyConvLSTMCell: im2col of the 9 3x3 taps of [attfeat | h], then one big MXU matmul ----
    u = jnp.concatenate([attfeat, h_sc[...]], axis=-1).astype(jnp.bfloat16)      # (49, C+MEM)
    zs = [jnp.dot(tshift_ref[k], u, preferred_element_type=jnp.float32)          # shift-select
          for k in range(9)]
    z = jnp.concatenate(zs, axis=-1).astype(jnp.bfloat16)              # (49, 9*(C+MEM))
    gates = jnp.dot(z, wbig_ref[...],
                    preferred_element_type=jnp.float32) + bias_ref[...]          # (49, 4*MEM)

    i_t = jax.nn.sigmoid(gates[:, 0 * mem:1 * mem])
    f_t = jax.nn.sigmoid(gates[:, 1 * mem:2 * mem])
    g_t = jnp.tanh(gates[:, 2 * mem:3 * mem])
    o_t = jax.nn.sigmoid(gates[:, 3 * mem:4 * mem])
    c_new = g_t * i_t + c_sc[...] * f_t
    h_sc[...] = o_t * jnp.tanh(c_new)
    c_sc[...] = c_new

    # ---- epilogue on the last timestep: AvgPool2d(7) + Dropout(0.7, eval=identity) + Linear ----
    @pl.when(t == pl.num_programs(1) - 1)
    def _finalize():
        feats = jnp.sum(c_new, axis=0, keepdims=True) * (1.0 / hw)     # (1, MEM)
        feats_ref[0] = feats
        logits_ref[0] = jnp.dot(feats, fcw_ref[...],
                                preferred_element_type=jnp.float32) + fcb_ref[...]


def convlstm_sequence(wcls, fconv, fnbn, t_shift, w_big, bias2d, fc_wT, fc_b2d):
    """Fused T-step ConvLSTM-with-attention + avgpool/classifier epilogue in one pallas_call."""
    t_steps, bsz, hw, ch = fconv.shape
    mem, ncls = fc_wT.shape
    grid_spec = pltpu.PrefetchScalarGridSpec(
        num_scalar_prefetch=0,
        grid=(bsz, t_steps),                      # batch outer (parallel), time inner (recurrence)
        in_specs=[
            pl.BlockSpec((1, 1, 1, ch), lambda b, t: (t, b, 0, 0)),            # w_cls
            pl.BlockSpec((1, 1, hw, ch), lambda b, t: (t, b, 0, 0)),           # feature_conv
            pl.BlockSpec((1, 1, hw, ch), lambda b, t: (t, b, 0, 0)),           # feature_convNBN
            pl.BlockSpec((9, hw, hw), lambda b, t: (0, 0, 0)),                 # shift selectors
            pl.BlockSpec((9 * (ch + mem), 4 * mem), lambda b, t: (0, 0)),      # [Wx|Wh] im2col
            pl.BlockSpec((1, 4 * mem), lambda b, t: (0, 0)),                   # conv bias
            pl.BlockSpec((mem, ncls), lambda b, t: (0, 0)),                    # fc weight^T
            pl.BlockSpec((1, ncls), lambda b, t: (0, 0)),                      # fc bias
        ],
        out_specs=[
            pl.BlockSpec((1, 1, mem), lambda b, t: (b, 0, 0)),                 # feats_avgpool
            pl.BlockSpec((1, 1, ncls), lambda b, t: (b, 0, 0)),                # feats_classifier
        ],
        scratch_shapes=[
            pltpu.VMEM((hw, mem), jnp.float32),   # h (resident across the whole T axis)
            pltpu.VMEM((hw, mem), jnp.float32),   # c
        ],
    )
    feats3, logits3 = pl.pallas_call(
        convlstm_seq_kernel,
        out_shape=(jax.ShapeDtypeStruct((bsz, 1, mem), jnp.float32),
                   jax.ShapeDtypeStruct((bsz, 1, ncls), jnp.float32)),
        grid_spec=grid_spec,
        compiler_params=pltpu.CompilerParams(
            dimension_semantics=("parallel", "arbitrary")),   # batch across v7x cores, time serial
    )(wcls, fconv, fnbn, t_shift, w_big, bias2d, fc_wT, fc_b2d)
    return feats3.reshape(bsz, mem), logits3.reshape(bsz, ncls)


# ------------------------------------------------------------------ stand-in backbone (glue)
# TODO(synk): resnetMod.resnet34 is an external module (not part of selfSupModel itself);
#             replaced here by a deterministic 1-conv stand-in that emits
#             (logit, feature_conv, feature_convNBN) with the same shape relationships,
#             where logit = GAP(feature_conv) @ weight_softmax.T + bias (the real CAM pathway).
def standin_backbone(frames, p):
    feat_nbn = lax.conv_general_dilated(
        frames, p["conv_w"], window_strides=(8, 8), padding="VALID",
        dimension_numbers=("NCHW", "OIHW", "NCHW")) + p["conv_b"][None, :, None, None]
    feat = jnp.maximum(feat_nbn * p["bn_g"][None, :, None, None]
                       + p["bn_b"][None, :, None, None], 0.0)          # (N, C, 7, 7)
    pooled = jnp.mean(feat, axis=(2, 3))                               # (N, C)
    logit = pooled @ p["wsoft"].T + p["fc_b_res"]                      # (N, NRES)
    n, ch = feat.shape[0], feat.shape[1]
    return logit, feat.reshape(n, ch, -1), feat_nbn.reshape(n, ch, -1)


# ------------------------------------------------------------------ full forward (Pallas path)
def self_sup_model_forward(inputVariable, mmaps_label, params):
    del mmaps_label  # motion_segmentation=False -> labels unused, sum_loss_mmap stays 0
    t_steps, bsz = inputVariable.shape[0], inputVariable.shape[1]
    # backbone for all T*B frames at once (no recurrence dependence)
    frames = inputVariable.reshape((t_steps * bsz,) + inputVariable.shape[2:])
    logit, fconv, fnbn = standin_backbone(frames, params)
    # CAM class selection (torch: logit.sort(1, True)[1][:, 0]) + weight_softmax row gather,
    # done as plain-JAX glue: cheaper than an in-kernel 1xNRES one-hot matmul.
    cls = jnp.argmax(logit, axis=-1)
    wcls = params["wsoft"][cls].reshape(t_steps, bsz, 1, FEAT_C)
    # transpose to lane-dense, position-major / channel-last layout for the kernel
    fconv_t = jnp.transpose(fconv, (0, 2, 1)).reshape(t_steps, bsz, HW, FEAT_C)
    fnbn_t = jnp.transpose(fnbn, (0, 2, 1)).reshape(t_steps, bsz, HW, FEAT_C)
    feats_avgpool, feats_classifier = convlstm_sequence(
        wcls, fconv_t, fnbn_t, params["t_shift"], params["w_big"],
        params["bias2d"], params["fc_wT"], params["fc_b2d"])
    sum_loss_mmap = jnp.float32(0.0)
    return feats_classifier, feats_avgpool, sum_loss_mmap


# ------------------------------------------------------------------ pure-JAX reference
def reference_forward(inputVariable, params):
    t_steps, bsz = inputVariable.shape[0], inputVariable.shape[1]
    h = jnp.zeros((bsz, MEM, HW), jnp.float32)
    c = jnp.zeros((bsz, MEM, HW), jnp.float32)
    for t in range(t_steps):
        logit, fconv, fnbn = standin_backbone(inputVariable[t], params)
        cls = jnp.argmax(logit, axis=1)
        w_cls = params["wsoft"][cls]                                   # (B, C)
        cam = jnp.einsum("bc,bcp->bp", w_cls, fconv)
        att = jax.nn.softmax(cam, axis=1)
        attfeat = (fnbn * att[:, None, :]).reshape(bsz, FEAT_C, HH, WW)
        h4 = h.reshape(bsz, MEM, HH, WW)
        gx = lax.conv_general_dilated(attfeat, params["wx"], (1, 1), "SAME",
                                      dimension_numbers=("NCHW", "OIHW", "NCHW"))
        gh = lax.conv_general_dilated(h4, params["wh"], (1, 1), "SAME",
                                      dimension_numbers=("NCHW", "OIHW", "NCHW"))
        g = gx + params["bx"][None, :, None, None] + gh
        i_t = jax.nn.sigmoid(g[:, 0 * MEM:1 * MEM])
        f_t = jax.nn.sigmoid(g[:, 1 * MEM:2 * MEM])
        g_t = jnp.tanh(g[:, 2 * MEM:3 * MEM])
        o_t = jax.nn.sigmoid(g[:, 3 * MEM:4 * MEM])
        c4 = c.reshape(bsz, MEM, HH, WW)
        c_new = g_t * i_t + c4 * f_t
        h_new = o_t * jnp.tanh(c_new)
        h = h_new.reshape(bsz, MEM, HW)
        c = c_new.reshape(bsz, MEM, HW)
    feats = jnp.mean(c, axis=-1)
    logits = feats @ params["fc_wT"] + params["fc_b2d"]
    return logits, feats, jnp.float32(0.0)


# ------------------------------------------------------------------ parameter init (deterministic)
def init_params(key):
    ks = jax.random.split(key, 11)
    s = 0.05
    wx = s * jax.random.normal(ks[6], (4 * MEM, FEAT_C, 3, 3), jnp.float32)
    wh = s * jax.random.normal(ks[7], (4 * MEM, MEM, 3, 3), jnp.float32)
    bx = s * jax.random.normal(ks[8], (4 * MEM,), jnp.float32)
    fc_w = s * jax.random.normal(ks[9], (N_CLASSES, MEM), jnp.float32)
    fc_b = s * jax.random.normal(ks[10], (N_CLASSES,), jnp.float32)

    # im2col-ready gate weight: rows ordered [tap k][attfeat channels | h channels], bf16 for MXU
    wx9 = wx.reshape(4 * MEM, FEAT_C, 9)        # tap k = 3*(dy+1) + (dx+1)
    wh9 = wh.reshape(4 * MEM, MEM, 9)
    w_big = jnp.concatenate(
        [jnp.concatenate([wx9[:, :, k].T, wh9[:, :, k].T], axis=0) for k in range(9)],
        axis=0).astype(jnp.bfloat16)            # (9*(C+MEM), 4*MEM)

    return dict(
        conv_w=s * jax.random.normal(ks[0], (FEAT_C, 3, 8, 8), jnp.float32),
        conv_b=s * jax.random.normal(ks[1], (FEAT_C,), jnp.float32),
        bn_g=1.0 + s * jax.random.normal(ks[2], (FEAT_C,), jnp.float32),
        bn_b=s * jax.random.normal(ks[3], (FEAT_C,), jnp.float32),
        wsoft=s * jax.random.normal(ks[4], (N_RES_CLASSES, FEAT_C), jnp.float32),
        fc_b_res=s * jax.random.normal(ks[5], (N_RES_CLASSES,), jnp.float32),
        wx=wx, wh=wh, bx=bx,
        # kernel-ready layouts
        w_big=w_big,
        t_shift=make_shift_matrices().astype(jnp.bfloat16),
        bias2d=bx.reshape(1, 4 * MEM),
        fc_wT=fc_w.T,
        fc_b2d=fc_b.reshape(1, N_CLASSES),
    )


if __name__ == "__main__":
    key = jax.random.PRNGKey(0)
    k_in, k_p = jax.random.split(key)
    params = init_params(k_p)

    inputVariable = jax.random.normal(k_in, (T, B, 3, IMG, IMG), jnp.float32)
    mmaps_label = jnp.zeros((T, B, HH, WW), jnp.float32)  # unused (motion_segmentation=False)

    fwd = jax.jit(self_sup_model_forward)
    feats_classifier, feats_avgpool, sum_loss = fwd(inputVariable, mmaps_label, params)
    jax.block_until_ready((feats_classifier, feats_avgpool, sum_loss))

    # sanity check against a pure-JAX reference of the same forward semantics
    ref_cls, ref_feat, _ = reference_forward(inputVariable, params)
    np.testing.assert_allclose(np.asarray(feats_avgpool), np.asarray(ref_feat),
                               rtol=5e-2, atol=5e-3)
    np.testing.assert_allclose(np.asarray(feats_classifier), np.asarray(ref_cls),
                               rtol=5e-2, atol=5e-3)
    assert feats_classifier.shape == (B, N_CLASSES)
    assert feats_avgpool.shape == (B, MEM)
    assert float(sum_loss) == 0.0

    print("KERNEL_OK")
</pallas_src>

<mosaic_0001>
module attributes {stable_mosaic.version = 11 : i64} {
  func.func @convlstm_seq_kernel(%arg0: i32, %arg1: i32, %arg2: memref<1x1x1x64xf32, #tpu.memory_space<vmem>>, %arg3: memref<1x1x49x64xf32, #tpu.memory_space<vmem>>, %arg4: memref<1x1x49x64xf32, #tpu.memory_space<vmem>>, %arg5: memref<9x49x49xbf16, #tpu.memory_space<vmem>>, %arg6: memref<864x128xbf16, #tpu.memory_space<vmem>>, %arg7: memref<1x128xf32, #tpu.memory_space<vmem>>, %arg8: memref<32x10xf32, #tpu.memory_space<vmem>>, %arg9: memref<1x10xf32, #tpu.memory_space<vmem>>, %arg10: memref<1x1x32xf32, #tpu.memory_space<vmem>>, %arg11: memref<1x1x10xf32, #tpu.memory_space<vmem>>, %arg12: memref<49x32xf32, #tpu.memory_space<vmem>>, %arg13: memref<49x32xf32, #tpu.memory_space<vmem>>) attributes {dimension_semantics = [#tpu.dimension_semantics<parallel>, #tpu.dimension_semantics<arbitrary>], iteration_bounds = array<i64: 2, 3>, scalar_prefetch = 0 : i64, scratch_operands = 2 : i64, tpu.core_type = #tpu.core_type<tc>, window_params = [{transform_indices = @transform_0, window_bounds = array<i64: 1, 1, 1, 64>}, {transform_indices = @transform_1, window_bounds = array<i64: 1, 1, 49, 64>}, {transform_indices = @transform_2, window_bounds = array<i64: 1, 1, 49, 64>}, {pipeline_mode = #tpu.pipeline_mode<synchronous>, transform_indices = @transform_3, window_bounds = array<i64: 9, 49, 49>}, {pipeline_mode = #tpu.pipeline_mode<synchronous>, transform_indices = @transform_4, window_bounds = array<i64: 864, 128>}, {pipeline_mode = #tpu.pipeline_mode<synchronous>, transform_indices = @transform_5, window_bounds = array<i64: 1, 128>}, {pipeline_mode = #tpu.pipeline_mode<synchronous>, transform_indices = @transform_6, window_bounds = array<i64: 32, 10>}, {pipeline_mode = #tpu.pipeline_mode<synchronous>, transform_indices = @transform_7, window_bounds = array<i64: 1, 10>}, {transform_indices = @transform_8, window_bounds = array<i64: 1, 1, 32>}, {transform_indices = @transform_9, window_bounds = array<i64: 1, 1, 10>}]} {
    %c0_i32 = arith.constant 0 : i32
    %0 = arith.cmpi eq, %arg1, %c0_i32 : i32
    %1 = arith.extui %0 : i1 to i32
    %c0_i32_0 = arith.constant 0 : i32
    %2 = arith.cmpi ne, %1, %c0_i32_0 : i32
    scf.if %2 {
      %cst_59 = arith.constant 0.000000e+00 : f32
      %93 = vector.broadcast %cst_59 : f32 to vector<49x32xf32>
      %c0_60 = arith.constant 0 : index
      %c0_61 = arith.constant 0 : index
      %94 = vector.load %arg12[%c0_60, %c0_61] : memref<49x32xf32, #tpu.memory_space<vmem>>, vector<49x32xf32>
      tpu.vector_store %arg12[%c0_60, %c0_61], %93 {strides = array<i32>} : memref<49x32xf32, #tpu.memory_space<vmem>>, vector<49x32xf32>,
      %cst_62 = arith.constant 0.000000e+00 : f32
      %95 = vector.broadcast %cst_62 : f32 to vector<49x32xf32>
      %c0_63 = arith.constant 0 : index
      %c0_64 = arith.constant 0 : index
      %96 = vector.load %arg13[%c0_63, %c0_64] : memref<49x32xf32, #tpu.memory_space<vmem>>, vector<49x32xf32>
      tpu.vector_store %arg13[%c0_63, %c0_64], %95 {strides = array<i32>} : memref<49x32xf32, #tpu.memory_space<vmem>>, vector<49x32xf32>,
    } else {
    }
    %c0 = arith.constant 0 : index
    %c0_1 = arith.constant 0 : index
    %c0_2 = arith.constant 0 : index
    %c0_3 = arith.constant 0 : index
    %3 = vector.load %arg3[%c0, %c0_1, %c0_2, %c0_3] : memref<1x1x49x64xf32, #tpu.memory_space<vmem>>, vector<1x1x49x64xf32>
    %4 = vector.shape_cast %3 : vector<1x1x49x64xf32> to vector<49x64xf32>
    %c0_4 = arith.constant 0 : index
    %c0_5 = arith.constant 0 : index
    %c0_6 = arith.constant 0 : index
    %c0_7 = arith.constant 0 : index
    %5 = vector.load %arg4[%c0_4, %c0_5, %c0_6, %c0_7] : memref<1x1x49x64xf32, #tpu.memory_space<vmem>>, vector<1x1x49x64xf32>
    %6 = vector.shape_cast %5 : vector<1x1x49x64xf32> to vector<49x64xf32>
    %c0_8 = arith.constant 0 : index
    %c0_9 = arith.constant 0 : index
    %c0_10 = arith.constant 0 : index
    %c0_11 = arith.constant 0 : index
    %7 = vector.load %arg2[%c0_8, %c0_9, %c0_10, %c0_11] : memref<1x1x1x64xf32, #tpu.memory_space<vmem>>, vector<1x1x1x64xf32>
    %8 = vector.shape_cast %7 : vector<1x1x1x64xf32> to vector<1x64xf32>
    %9 = vector.broadcast %8 : vector<1x64xf32> to vector<49x64xf32>
    %10 = arith.mulf %4, %9 : vector<49x64xf32>
    %cst = arith.constant dense<0.000000e+00> : vector<49xf32>
    %11 = vector.multi_reduction <add>, %10, %cst [1] : vector<49x64xf32> to vector<49xf32>
    %12 = vector.shape_cast %11 : vector<49xf32> to vector<49x1xf32>
    %cst_12 = arith.constant dense<0xFF800000> : vector<1xf32>
    %13 = vector.multi_reduction <maximumf>, %12, %cst_12 [0] : vector<49x1xf32> to vector<1xf32>
    %14 = vector.shape_cast %13 : vector<1xf32> to vector<1x1xf32>
    %15 = vector.broadcast %14 : vector<1x1xf32> to vector<49x1xf32>
    %16 = arith.subf %12, %15 : vector<49x1xf32>
    %17 = math.exp %16 : vector<49x1xf32>
    %cst_13 = arith.constant dense<0.000000e+00> : vector<1xf32>
    %18 = vector.multi_reduction <add>, %17, %cst_13 [0] : vector<49x1xf32> to vector<1xf32>
    %19 = vector.shape_cast %18 : vector<1xf32> to vector<1x1xf32>
    %20 = tpu.reciprocal %19 {approx = true} : vector<1x1xf32> -> vector<1x1xf32>
    %21 = vector.broadcast %20 : vector<1x1xf32> to vector<49x1xf32>
    %22 = arith.mulf %17, %21 : vector<49x1xf32>
    %23 = vector.broadcast %22 : vector<49x1xf32> to vector<49x64xf32>
    %24 = arith.mulf %6, %23 : vector<49x64xf32>
    %c0_14 = arith.constant 0 : index
    %c0_15 = arith.constant 0 : index
    %25 = vector.load %arg12[%c0_14, %c0_15] : memref<49x32xf32, #tpu.memory_space<vmem>>, vector<49x32xf32>
    %26 = tpu.concatenate %24, %25 in 1 : vector<49x64xf32>, vector<49x32xf32> -> vector<49x96xf32>
    %27 = arith.truncf %26 : vector<49x96xf32> to vector<49x96xbf16>
    %c0_16 = arith.constant 0 : index
    %c0_17 = arith.constant 0 : index
    %c0_18 = arith.constant 0 : index
    %28 = vector.load %arg5[%c0_16, %c0_17, %c0_18] : memref<9x49x49xbf16, #tpu.memory_space<vmem>>, vector<1x49x49xbf16>
    %29 = vector.shape_cast %28 : vector<1x49x49xbf16> to vector<49x49xbf16>
    %cst_19 = arith.constant dense<0.000000e+00> : vector<49x96xf32>
    %30 = tpu.matmul %29, %27, %cst_19 {dimension_numbers = #tpu.dot_dimension_numbers<[1], [0], [0], [1], [0, 0, 1, 1], [], []>} : vector<49x49xbf16>, vector<49x96xbf16>, vector<49x96xf32> -> vector<49x96xf32>
    %c1 = arith.constant 1 : index
    %c0_20 = arith.constant 0 : index
    %c0_21 = arith.constant 0 : index
    %31 = vector.load %arg5[%c1, %c0_20, %c0_21] : memref<9x49x49xbf16, #tpu.memory_space<vmem>>, vector<1x49x49xbf16>
    %32 = vector.shape_cast %31 : vector<1x49x49xbf16> to vector<49x49xbf16>
    %cst_22 = arith.constant dense<0.000000e+00> : vector<49x96xf32>
    %33 = tpu.matmul %32, %27, %cst_22 {dimension_numbers = #tpu.dot_dimension_numbers<[1], [0], [0], [1], [0, 0, 1, 1], [], []>} : vector<49x49xbf16>, vector<49x96xbf16>, vector<49x96xf32> -> vector<49x96xf32>
    %c2 = arith.constant 2 : index
    %c0_23 = arith.constant 0 : index
    %c0_24 = arith.constant 0 : index
    %34 = vector.load %arg5[%c2, %c0_23, %c0_24] : memref<9x49x49xbf16, #tpu.memory_space<vmem>>, vector<1x49x49xbf16>
    %35 = vector.shape_cast %34 : vector<1x49x49xbf16> to vector<49x49xbf16>
    %cst_25 = arith.constant dense<0.000000e+00> : vector<49x96xf32>
    %36 = tpu.matmul %35, %27, %cst_25 {dimension_numbers = #tpu.dot_dimension_numbers<[1], [0], [0], [1], [0, 0, 1, 1], [], []>} : vector<49x49xbf16>, vector<49x96xbf16>, vector<49x96xf32> -> vector<49x96xf32>
    %c3 = arith.constant 3 : index
    %c0_26 = arith.constant 0 : index
    %c0_27 = arith.constant 0 : index
    %37 = vector.load %arg5[%c3, %c0_26, %c0_27] : memref<9x49x49xbf16, #tpu.memory_space<vmem>>, vector<1x49x49xbf16>
    %38 = vector.shape_cast %37 : vector<1x49x49xbf16> to vector<49x49xbf16>
    %cst_28 = arith.constant dense<0.000000e+00> : vector<49x96xf32>
    %39 = tpu.matmul %38, %27, %cst_28 {dimension_numbers = #tpu.dot_dimension_numbers<[1], [0], [0], [1], [0, 0, 1, 1], [], []>} : vector<49x49xbf16>, vector<49x96xbf16>, vector<49x96xf32> -> vector<49x96xf32>
    %c4 = arith.constant 4 : index
    %c0_29 = arith.constant 0 : index
    %c0_30 = arith.constant 0 : index
    %40 = vector.load %arg5[%c4, %c0_29, %c0_30] : memref<9x49x49xbf16, #tpu.memory_space<vmem>>, vector<1x49x49xbf16>
    %41 = vector.shape_cast %40 : vector<1x49x49xbf16> to vector<49x49xbf16>
    %cst_31 = arith.constant dense<0.000000e+00> : vector<49x96xf32>
    %42 = tpu.matmul %41, %27, %cst_31 {dimension_numbers = #tpu.dot_dimension_numbers<[1], [0], [0], [1], [0, 0, 1, 1], [], []>} : vector<49x49xbf16>, vector<49x96xbf16>, vector<49x96xf32> -> vector<49x96xf32>
    %c5 = arith.constant 5 : index
    %c0_32 = arith.constant 0 : index
    %c0_33 = arith.constant 0 : index
    %43 = vector.load %arg5[%c5, %c0_32, %c0_33] : memref<9x49x49xbf16, #tpu.memory_space<vmem>>, vector<1x49x49xbf16>
    %44 = vector.shape_cast %43 : vector<1x49x49xbf16> to vector<49x49xbf16>
    %cst_34 = arith.constant dense<0.000000e+00> : vector<49x96xf32>
    %45 = tpu.matmul %44, %27, %cst_34 {dimension_numbers = #tpu.dot_dimension_numbers<[1], [0], [0], [1], [0, 0, 1, 1], [], []>} : vector<49x49xbf16>, vector<49x96xbf16>, vector<49x96xf32> -> vector<49x96xf32>
    %c6 = arith.constant 6 : index
    %c0_35 = arith.constant 0 : index
    %c0_36 = arith.constant 0 : index
    %46 = vector.load %arg5[%c6, %c0_35, %c0_36] : memref<9x49x49xbf16, #tpu.memory_space<vmem>>, vector<1x49x49xbf16>
    %47 = vector.shape_cast %46 : vector<1x49x49xbf16> to vector<49x49xbf16>
    %cst_37 = arith.constant dense<0.000000e+00> : vector<49x96xf32>
    %48 = tpu.matmul %47, %27, %cst_37 {dimension_numbers = #tpu.dot_dimension_numbers<[1], [0], [0], [1], [0, 0, 1, 1], [], []>} : vector<49x49xbf16>, vector<49x96xbf16>, vector<49x96xf32> -> vector<49x96xf32>
    %c7 = arith.constant 7 : index
    %c0_38 = arith.constant 0 : index
    %c0_39 = arith.constant 0 : index
    %49 = vector.load %arg5[%c7, %c0_38, %c0_39] : memref<9x49x49xbf16, #tpu.memory_space<vmem>>, vector<1x49x49xbf16>
    %50 = vector.shape_cast %49 : vector<1x49x49xbf16> to vector<49x49xbf16>
    %cst_40 = arith.constant dense<0.000000e+00> : vector<49x96xf32>
    %51 = tpu.matmul %50, %27, %cst_40 {dimension_numbers = #tpu.dot_dimension_numbers<[1], [0], [0], [1], [0, 0, 1, 1], [], []>} : vector<49x49xbf16>, vector<49x96xbf16>, vector<49x96xf32> -> vector<49x96xf32>
    %c8 = arith.constant 8 : index
    %c0_41 = arith.constant 0 : index
    %c0_42 = arith.constant 0 : index
    %52 = vector.load %arg5[%c8, %c0_41, %c0_42] : memref<9x49x49xbf16, #tpu.memory_space<vmem>>, vector<1x49x49xbf16>
    %53 = vector.shape_cast %52 : vector<1x49x49xbf16> to vector<49x49xbf16>
    %cst_43 = arith.constant dense<0.000000e+00> : vector<49x96xf32>
    %54 = tpu.matmul %53, %27, %cst_43 {dimension_numbers = #tpu.dot_dimension_numbers<[1], [0], [0], [1], [0, 0, 1, 1], [], []>} : vector<49x49xbf16>, vector<49x96xbf16>, vector<49x96xf32> -> vector<49x96xf32>
    %55 = tpu.concatenate %30, %33, %36, %39, %42, %45, %48, %51, %54 in 1 : vector<49x96xf32>, vector<49x96xf32>, vector<49x96xf32>, vector<49x96xf32>, vector<49x96xf32>, vector<49x96xf32>, vector<49x96xf32>, vector<49x96xf32>, vector<49x96xf32> -> vector<49x864xf32>
    %56 = arith.truncf %55 : vector<49x864xf32> to vector<49x864xbf16>
    %c0_44 = arith.constant 0 : index
    %c0_45 = arith.constant 0 : index
    %57 = vector.load %arg6[%c0_44, %c0_45] : memref<864x128xbf16, #tpu.memory_space<vmem>>, vector<864x128xbf16>
    %cst_46 = arith.constant dense<0.000000e+00> : vector<49x128xf32>
    %58 = tpu.matmul %56, %57, %cst_46 {dimension_numbers = #tpu.dot_dimension_numbers<[1], [0], [0], [1], [0, 0, 1, 1], [], []>} : vector<49x864xbf16>, vector<864x128xbf16>, vector<49x128xf32> -> vector<49x128xf32>
    %c0_47 = arith.constant 0 : index
    %c0_48 = arith.constant 0 : index
    %59 = vector.load %arg7[%c0_47, %c0_48] : memref<1x128xf32, #tpu.memory_space<vmem>>, vector<1x128xf32>
    %60 = vector.broadcast %59 : vector<1x128xf32> to vector<49x128xf32>
    %61 = arith.addf %58, %60 : vector<49x128xf32>
    %62 = vector.extract_strided_slice %61 {offsets = [0, 0], sizes = [49, 32], strides = [1, 1]} : vector<49x128xf32> to vector<49x32xf32>
    %63 = arith.negf %62 : vector<49x32xf32>
    %64 = math.exp %63 : vector<49x32xf32>
    %cst_49 = arith.constant 1.000000e+00 : f32
    %65 = vector.broadcast %cst_49 : f32 to vector<49x32xf32>
    %66 = arith.addf %65, %64 : vector<49x32xf32>
    %67 = arith.divf %65, %66 : vector<49x32xf32>
    %68 = vector.extract_strided_slice %61 {offsets = [0, 32], sizes = [49, 32], strides = [1, 1]} : vector<49x128xf32> to vector<49x32xf32>
    %69 = arith.negf %68 : vector<49x32xf32>
    %70 = math.exp %69 : vector<49x32xf32>
    %cst_50 = arith.constant 1.000000e+00 : f32
    %71 = vector.broadcast %cst_50 : f32 to vector<49x32xf32>
    %72 = arith.addf %71, %70 : vector<49x32xf32>
    %73 = arith.divf %71, %72 : vector<49x32xf32>
    %74 = vector.extract_strided_slice %61 {offsets = [0, 64], sizes = [49, 32], strides = [1, 1]} : vector<49x128xf32> to vector<49x32xf32>
    %75 = math.tanh %74 : vector<49x32xf32>
    %76 = vector.extract_strided_slice %61 {offsets = [0, 96], sizes = [49, 32], strides = [1, 1]} : vector<49x128xf32> to vector<49x32xf32>
    %77 = arith.negf %76 : vector<49x32xf32>
    %78 = math.exp %77 : vector<49x32xf32>
    %cst_51 = arith.constant 1.000000e+00 : f32
    %79 = vector.broadcast %cst_51 : f32 to vector<49x32xf32>
    %80 = arith.addf %79, %78 : vector<49x32xf32>
    %81 = arith.divf %79, %80 : vector<49x32xf32>
    %82 = arith.mulf %75, %67 : vector<49x32xf32>
    %c0_52 = arith.constant 0 : index
    %c0_53 = arith.constant 0 : index
    %83 = vector.load %arg13[%c0_52, %c0_53] : memref<49x32xf32, #tpu.memory_space<vmem>>, vector<49x32xf32>
    %84 = arith.mulf %83, %73 : vector<49x32xf32>
    %85 = arith.addf %82, %84 : vector<49x32xf32>
    %86 = math.tanh %85 : vector<49x32xf32>
    %87 = arith.mulf %81, %86 : vector<49x32xf32>
    %c0_54 = arith.constant 0 : index
    %c0_55 = arith.constant 0 : index
    %88 = vector.load %arg12[%c0_54, %c0_55] : memref<49x32xf32, #tpu.memory_space<vmem>>, vector<49x32xf32>
    tpu.vector_store %arg12[%c0_54, %c0_55], %87 {strides = array<i32>} : memref<49x32xf32, #tpu.memory_space<vmem>>, vector<49x32xf32>,
    %c0_56 = arith.constant 0 : index
    %c0_57 = arith.constant 0 : index
    %89 = vector.load %arg13[%c0_56, %c0_57] : memref<49x32xf32, #tpu.memory_space<vmem>>, vector<49x32xf32>
    tpu.vector_store %arg13[%c0_56, %c0_57], %85 {strides = array<i32>} : memref<49x32xf32, #tpu.memory_space<vmem>>, vector<49x32xf32>,
    %c2_i32 = arith.constant 2 : i32
    %90 = arith.cmpi eq, %arg1, %c2_i32 : i32
    %91 = arith.extui %90 : i1 to i32
    %c0_i32_58 = arith.constant 0 : i32
    %92 = arith.cmpi ne, %91, %c0_i32_58 : i32
    scf.if %92 {
      %cst_59 = arith.constant dense<0.000000e+00> : vector<32xf32>
      %93 = vector.multi_reduction <add>, %85, %cst_59 [0] : vector<49x32xf32> to vector<32xf32>
      %94 = vector.shape_cast %93 : vector<32xf32> to vector<1x32xf32>
      %cst_60 = arith.constant 0.0204081628 : f32
      %95 = vector.broadcast %cst_60 : f32 to vector<1x32xf32>
      %96 = arith.mulf %94, %95 : vector<1x32xf32>
      %c0_61 = arith.constant 0 : index
      %c0_62 = arith.constant 0 : index
      %c0_63 = arith.constant 0 : index
      %97 = vector.load %arg10[%c0_61, %c0_62, %c0_63] : memref<1x1x32xf32, #tpu.memory_space<vmem>>, vector<1x1x32xf32>
      %98 = vector.shape_cast %97 : vector<1x1x32xf32> to vector<1x32xf32>
      %99 = vector.shape_cast %96 : vector<1x32xf32> to vector<1x1x32xf32>
      tpu.vector_store %arg10[%c0_61, %c0_62, %c0_63], %99 {strides = array<i32>} : memref<1x1x32xf32, #tpu.memory_space<vmem>>, vector<1x1x32xf32>,
      %c0_64 = arith.constant 0 : index
      %c0_65 = arith.constant 0 : index
      %100 = vector.load %arg8[%c0_64, %c0_65] : memref<32x10xf32, #tpu.memory_space<vmem>>, vector<32x10xf32>
      %cst_66 = arith.constant dense<0.000000e+00> : vector<1x10xf32>
      %101 = tpu.matmul %96, %100, %cst_66 {dimension_numbers = #tpu.dot_dimension_numbers<[1], [0], [0], [1], [0, 0, 1, 1], [], []>} : vector<1x32xf32>, vector<32x10xf32>, vector<1x10xf32> -> vector<1x10xf32>
      %c0_67 = arith.constant 0 : index
      %c0_68 = arith.constant 0 : index
      %102 = vector.load %arg9[%c0_67, %c0_68] : memref<1x10xf32, #tpu.memory_space<vmem>>, vector<1x10xf32>
      %103 = arith.addf %101, %102 : vector<1x10xf32>
      %c0_69 = arith.constant 0 : index
      %c0_70 = arith.constant 0 : index
      %c0_71 = arith.constant 0 : index
      %104 = vector.load %arg11[%c0_69, %c0_70, %c0_71] : memref<1x1x10xf32, #tpu.memory_space<vmem>>, vector<1x1x10xf32>
      %105 = vector.shape_cast %104 : vector<1x1x10xf32> to vector<1x10xf32>
      %106 = vector.shape_cast %103 : vector<1x10xf32> to vector<1x1x10xf32>
      tpu.vector_store %arg11[%c0_69, %c0_70, %c0_71], %106 {strides = array<i32>} : memref<1x1x10xf32, #tpu.memory_space<vmem>>, vector<1x1x10xf32>,
    } else {
    }
    return
  }
  func.func @transform_0(%arg0: i32, %arg1: i32) -> (i32, i32, i32, i32) {
    %c0_i32 = arith.constant 0 : i32
    %c0_i32_0 = arith.constant 0 : i32
    %c0_i32_1 = arith.constant 0 : i32
    return %arg1, %arg0, %c0_i32, %c0_i32_0 : i32, i32, i32, i32
  }
  func.func @transform_1(%arg0: i32, %arg1: i32) -> (i32, i32, i32, i32) {
    %c0_i32 = arith.constant 0 : i32
    %c0_i32_0 = arith.constant 0 : i32
    %c0_i32_1 = arith.constant 0 : i32
    return %arg1, %arg0, %c0_i32, %c0_i32_0 : i32, i32, i32, i32
  }
  func.func @transform_2(%arg0: i32, %arg1: i32) -> (i32, i32, i32, i32) {
    %c0_i32 = arith.constant 0 : i32
    %c0_i32_0 = arith.constant 0 : i32
    %c0_i32_1 = arith.constant 0 : i32
    return %arg1, %arg0, %c0_i32, %c0_i32_0 : i32, i32, i32, i32
  }
  func.func @transform_3(%arg0: i32, %arg1: i32) -> (i32, i32, i32) {
    %c0_i32 = arith.constant 0 : i32
    %c0_i32_0 = arith.constant 0 : i32
    %c0_i32_1 = arith.constant 0 : i32
    %c0_i32_2 = arith.constant 0 : i32
    return %c0_i32, %c0_i32_0, %c0_i32_1 : i32, i32, i32
  }
  func.func @transform_4(%arg0: i32, %arg1: i32) -> (i32, i32) {
    %c0_i32 = arith.constant 0 : i32
    %c0_i32_0 = arith.constant 0 : i32
    %c0_i32_1 = arith.constant 0 : i32
    return %c0_i32, %c0_i32_0 : i32, i32
  }
  func.func @transform_5(%arg0: i32, %arg1: i32) -> (i32, i32) {
    %c0_i32 = arith.constant 0 : i32
    %c0_i32_0 = arith.constant 0 : i32
    %c0_i32_1 = arith.constant 0 : i32
    return %c0_i32, %c0_i32_0 : i32, i32
  }
  func.func @transform_6(%arg0: i32, %arg1: i32) -> (i32, i32) {
    %c0_i32 = arith.constant 0 : i32
    %c0_i32_0 = arith.constant 0 : i32
    %c0_i32_1 = arith.constant 0 : i32
    return %c0_i32, %c0_i32_0 : i32, i32
  }
  func.func @transform_7(%arg0: i32, %arg1: i32) -> (i32, i32) {
    %c0_i32 = arith.constant 0 : i32
    %c0_i32_0 = arith.constant 0 : i32
    %c0_i32_1 = arith.constant 0 : i32
    return %c0_i32, %c0_i32_0 : i32, i32
  }
  func.func @transform_8(%arg0: i32, %arg1: i32) -> (i32, i32, i32) {
    %c0_i32 = arith.constant 0 : i32
    %c0_i32_0 = arith.constant 0 : i32
    %c0_i32_1 = arith.constant 0 : i32
    return %arg0, %c0_i32, %c0_i32_0 : i32, i32, i32
  }
  func.func @transform_9(%arg0: i32, %arg1: i32) -> (i32, i32, i32) {
    %c0_i32 = arith.constant 0 : i32
    %c0_i32_0 = arith.constant 0 : i32
    %c0_i32_1 = arith.constant 0 : i32
    return %arg0, %c0_i32, %c0_i32_0 : i32, i32, i32
  }
}

</mosaic_0001>

<bundles_post_ra>
// kernel: self_sup_model_forward.1
= control target key start
LH: loop header
LB: loop body
LE: loop exit
PB: predicated region body
PF: predicated region fallthrough
CT: control target
= control target key end

     0   :  { %15 = vsyncpa [#allocation5], 0  ;;  %s4490_s0 = inlined_call_operand.vmem [shape: f32[3,2,1,64], index: 0, kind: input, shape index: {}]   ;;  %s4491_s1 = inlined_call_operand.vmem [shape: f32[3,2,49,64], index: 1, kind: input, shape index: {}]   ;;  %s4492_s2 = inlined_call_operand.vmem [shape: f32[3,2,49,64], index: 2, kind: input, shape index: {}]   ;;  %s4493_s3 = inlined_call_operand.vmem [shape: bf16[9,49,49], index: 3, kind: input, shape index: {}]   ;;  %s4494_s4 = inlined_call_operand.vmem [shape: bf16[864,128], index: 4, kind: input, shape index: {}]   ;;  %s4495_s5 = inlined_call_operand.vmem [shape: f32[1,128], index: 5, kind: input, shape index: {}]   ;;  %s4496_s6 = inlined_call_operand.vmem [shape: f32[32,10], index: 6, kind: input, shape index: {}]   ;;  %s4497_s7 = inlined_call_operand.vmem [shape: f32[1,10], index: 7, kind: input, shape index: {}]   ;;  %s4498_s8 = inlined_call_operand.hbm [shape: f32[2,1,32], index: 8, kind: output, shape index: {0}]   ;;  %s4499_s9 = inlined_call_operand.hbm [shape: f32[2,1,10], index: 9, kind: output, shape index: {1}]  }
   0x1   :  { %17 = vsyncpa [#allocation5 + $0x1], 0 }
   0x2   :  { %18 = vsyncpa [#allocation7], 0 }
   0x3   :  { %20 = vsyncpa [#allocation7 + $0x1], 0  ;;  %s3644_s30 = smov 0   ;;  %s3646_s10 = smov 0  }
   0x4   :  { %s3648_s11 = smov 0   ;;  %s3650_s12 = smov 0  }
   0x5   :  { %s3652_s13 = smov 0   ;;  %s3654_s14 = smov 0  }
   0x6   :  { %s3656_s15 = smov 0   ;;  %s3658_s16 = smov 0  }
   0x7 LB: > { %4509 = sst [smem:[#allocation10_spill]] %s3558_s30  ;;  %s2676_s17 = sadd.s32 4294967295, %s3586_s16   ;;  %s3586_s16 = sphi %s3658_s16, %s26_s16   ;;  %s3582_s15 = sphi %s3656_s15, %s4530_s15   ;;  %s3578_s14 = sphi %s3654_s14, %s4529_s14   ;;  %s3574_s13 = sphi %s3652_s13, %s4528_s13   ;;  %s3570_s12 = sphi %s3650_s12, %s4527_s12   ;;  %s3566_s11 = sphi %s3648_s11, %s4526_s11   ;;  %s3562_s10 = sphi %s3646_s10, %s4525_s10   ;;  %s3558_s30 = sphi %s3644_s30, %s4524_s30  }
   0x8   : > { %4510 = sst [smem:[#allocation11_spill]] %s3562_s10  ;;  %s2677_s18 = sadd.s32 4294967294, %s3586_s16  }
   0x9   : > { %4511 = sst [smem:[#allocation12_spill]] %s3566_s11  ;;  %s35_s19 = sadd.s32 1, %s3578_s14 }
   0xa   : > { %4512 = sst [smem:[#allocation13_spill]] %s3578_s14  ;;  %p36_p0 = scmp.ge.s32.totalorder %s35_s19, 3 }
   0xb   : > { %4513 = sst [smem:[#allocation14_spill]] %s3582_s15  ;;  %s38_s20 = sadd.s32 1, %s3582_s15 }
   0xc   : > { %4514 = sst [smem:[#allocation15_spill]] %s3586_s16  ;;  %p244_p1 = scmp.ne.s32.totalorder %s3566_s11, %s3562_s10 }
   0xd   : > { %p245_p2 = scmp.eq.s32.totalorder %s2676_s17, 5  ;;  %s4532_s19 = smov (%p36_p0, %s35_s19), 0 }
   0xe   : > { %4515 = sst [smem:[#allocation16_spill]] %s4532_s19  ;;  %s4534_s20 = smov (!%p36_p0, %s38_s20), %s3582_s15 }
   0xf   : > { %p3693_p3 = por %p245_p2, %p244_p1  ;;  %p250_p4 = scmp.ne.s32.totalorder %s3562_s10, %s3558_s30 }
  0x10   : > { %p40_p5 = scmp.ge.s32.totalorder %s4534_s20, 2  ;;  %p251_p6 = scmp.eq.s32.totalorder %s2677_s18, 5 }
  0x11   : > { %p2680_p7 = scmp.ge.s32.totalorder %s3586_s16, 1  ;;  %p344_p8 = scmp.lt.s32.totalorder %s3586_s16, 7 }
  0x12   : > { %s4536_s20 = smov (%p40_p5, %s4534_s20), 0  ;;  %p3703_p9 = por %p251_p6, %p250_p4 }
  0x13   : > { %4517 = sst [smem:[#allocation17_spill]] %s4536_s20  ;;  %p345_p10 = pnand %p2680_p7, %p344_p8 }
  0x14   : > { %s4518_s22 = scalar_select %p3703_p9, 1, 0 }
  0x15   : > { %s231_s23 = ssub.s32 %s3582_s15, %s4536_s20  ;;  %s234_s24 = sadd.s32 1, %s3566_s11 }
  0x16   : > { %4519 = sst [smem:[#allocation18_spill]] %s4518_s22  ;;  %p232_p11 = scmp.eq.s32.totalorder %s231_s23, 0 }
  0x17   : > { %348 = sbr.rel (%p345_p10) target bundleno = 1580 (0x62c), region = 52  ;;  %s3714_s26 = sand.u32 (!%p345_p10), 1, %s3562_s10  }
  0x18   : > { %s3711_s25 = scalar_select %p232_p11, %s3566_s11, %s234_s24  }
  0x19   : > { %p403_p12 = scmp.lt.s32.totalorder (!%p345_p10), %s3570_s12, 2  ;;  %p405_p13 = scmp.lt.s32.totalorder (!%p345_p10), %s3574_s13, 1 }
  0x1a   : > { %4520 = sst [smem:[#allocation19_spill]] %s3711_s25  ;;  %s402_s16 = scalar_lea.vmem (!%p345_p10), [#allocation6], %s3714_s26 }
  0x1b   : > { %p2684_p0 = scmp.ne.s32.totalorder (!%p345_p10), %s3570_s12, 0 }
  0x1c   : > { %s404_s27 = scalar_select %p403_p12, %s3570_s12, 2 }
  0x1d   : > { %s406_s17 = scalar_select %p405_p13, %s3574_s13, 1 }
  0x1e   : > { %s2681_s28 = sshll.u32 %s404_s27, 1  ;;  %s3198_s29 = smul.u32 14, %s404_s27 }
  0x1f   : > { %s3720_s18 = sadd.s32 %s2681_s28, %s406_s17  ;;  %s3197_s23 = smul.u32 7, %s406_s17 }
  0x20   : > { %s409_s19 = scalar_lea.vmem %s4490_s0, %s3720_s18  ;;  %s396_s28 = scalar_lea.vmem [#allocation4], %s3714_s26 }
  0x21   : > { %s416_s15 = sadd.s32 %s3198_s29, %s3197_s23  ;;  %432 = sbr.rel (%p2684_p0) target bundleno = 53 (0x35), region = 56 }
  0x22   : > { %s2682_s14 = sshll.u32 %s416_s15, 3 }
  0x23   : > { %s3729_s10 = scalar_lea.vmem %s4491_s1, %s2682_s14  ;;  %s3734_s27 = scalar_lea.vmem %s4492_s2, %s2682_s14 }
  0x26   : > { %vm433_vm0 = vcmask 261120   ;;  %v3588_v0 = vmov 0.0   ;;  %vm440_vm1 = vcmask 253952  }
  0x27   : > { %434 = vst.msk [vmem:[#allocation2] sm:$0xff] %vm433_vm0, %v3588_v0 }
  0x28   : > { %435 = vst.msk [vmem:[#allocation2 + $0x8] sm:$0xff] %vm433_vm0, %v3588_v0 }
  0x29   : > { %436 = vst.msk [vmem:[#allocation2 + $0x10] sm:$0xff] %vm433_vm0, %v3588_v0 }
  0x2a   : > { %437 = vst.msk [vmem:[#allocation2 + $0x18] sm:$0xff] %vm433_vm0, %v3588_v0 }
  0x2b   : > { %438 = vst.msk [vmem:[#allocation2 + $0x20] sm:$0xff] %vm433_vm0, %v3588_v0 }
  0x2c   : > { %439 = vst.msk [vmem:[#allocation2 + $0x28] sm:$0xff] %vm433_vm0, %v3588_v0 }
  0x2d   : > { %442 = vst.msk [vmem:[#allocation3] sm:$0xff] %vm433_vm0, %v3588_v0 }
  0x2e   : > { %443 = vst.msk [vmem:[#allocation3 + $0x8] sm:$0xff] %vm433_vm0, %v3588_v0 }
  0x2f   : > { %444 = vst.msk [vmem:[#allocation3 + $0x10] sm:$0xff] %vm433_vm0, %v3588_v0 }
  0x30   : > { %445 = vst.msk [vmem:[#allocation3 + $0x18] sm:$0xff] %vm433_vm0, %v3588_v0 }
  0x31   : > { %446 = vst.msk [vmem:[#allocation3 + $0x20] sm:$0xff] %vm433_vm0, %v3588_v0 }
  0x32   : > { %447 = vst.msk [vmem:[#allocation3 + $0x28] sm:$0xff] %vm433_vm0, %v3588_v0 }
  0x33   : > { %441 = vst.msk [vmem:[#allocation2 + $0x30] sm:$0x1] %vm440_vm1, %v3588_v0 }
  0x34   : > { %448 = vst.msk [vmem:[#allocation3 + $0x30] sm:$0x1] %vm440_vm1, %v3588_v0 }
  0x35 PF: > { %v455_v1 = vld [vmem:[%s3729_s10 + $0x30] sm:$0x1]  ;;  %v3386_v2 = vld [vmem:[%s409_s19] ss:$0 sm:$0xff]  ;;  %vm493_vm2 = vcmask 516096   ;;  %vm474_vm3 = vcmask 523264  }
  0x36   : > { %v453_v3 = vld [vmem:[%s3729_s10 + $0x20] sm:$0xff]  ;;  %v450_v4 = vld [vmem:[%s3729_s10 + $0x8] sm:$0xff]  ;;  %v473_v5 = vmul.f32 %v3386_v2, %v455_v1  ;;  %v451_v13 = vld [vmem:[%s3729_s10 + $0x10] sm:$0xff]  ;;  %s3589_s30 = smov 64   ;;  %vm499_vm4 = vcmask 1040384   ;;  %vm631_vm5 = vcmask 400384  }
  0x37   : > { %v471_v6 = vmul.f32 %v3386_v2, %v453_v3  ;;  %v468_v7 = vmul.f32 %v3386_v2, %v450_v4  ;;  %v454_v8 = vld [vmem:[%s3729_s10 + $0x28] sm:$0xff]  ;;  %v449_v9 = vld [vmem:[%s3729_s10] sm:$0xff]  ;;  %v469_v16 = vmul.f32 %v3386_v2, %v451_v13  ;;  %v452_v20 = vld [vmem:[%s3729_s10 + $0x18] sm:$0xff]  ;;  %s3591_s22 = smov 96   ;;  %s3592_s17 = smov 32   ;;  %vm1373_vm6 = vcmask 785408  }
  0x38   : > { %v494_v10 = vsel %vm493_vm2, %v473_v5, 0.0  ;;  %v472_v14 = vmul.f32 %v3386_v2, %v454_v8  ;;  %v467_v15 = vmul.f32 %v3386_v2, %v449_v9  ;;  %v470_v21 = vmul.f32 %v3386_v2, %v452_v20  ;;  %v562_v23 = vld [vmem:[#allocation2 + $0x10] sm:$0xff]  ;;  %v565_v24 = vld [vmem:[#allocation2 + $0x28] sm:$0xff]  ;;  %v564_v25 = vld [vmem:[#allocation2 + $0x20] sm:$0xff]  ;;  %p3112_p1 = scmp.ne.s32.totalorder %s3570_s12, 2 }
  0x39   : > { %v487_v11 = vsel %vm474_vm3, %v471_v6, 0.0  ;;  %v478_v12 = vsel %vm474_vm3, %v468_v7, 0.0  ;;  %495 = vadd.xlane.f32.xlu0 %v494_v10  ;;  %v481_v19 = vsel %vm474_vm3, %v469_v16, 0.0  ;;  %v3286_v27 = vpack.i.bf16 %v562_v23, %v565_v24  ;;  %v560_v28 = vld [vmem:[#allocation2] sm:$0xff]  ;;  %v563_v29 = vld [vmem:[#allocation2 + $0x18] sm:$0xff]  ;;  %v561_v32 = vld [vmem:[#allocation2 + $0x8] sm:$0xff] }
  0x3a   : > { %488 = vadd.xlane.f32.xlu2 %v487_v11  ;;  %479 = vadd.xlane.f32.xlu1 %v478_v12  ;;  %v490_v17 = vsel %vm474_vm3, %v472_v14, 0.0  ;;  %v475_v18 = vsel %vm474_vm3, %v467_v15, 0.0  ;;  %v484_v22 = vsel %vm474_vm3, %v470_v21, 0.0  ;;  %v566_v26 = vld [vmem:[#allocation2 + $0x30] sm:$0x1]  ;;  %v3291_v31 = vpack.i.bf16 %v560_v28, %v563_v29  ;;  %s3593_s18 = smov (!%p3112_p1), 64  }
  0x3b   : > { %v3281_v30 = vpack.i.bf16 %v564_v25, %v566_v26  ;;  %v462_v25 = vld [vmem:[%s3734_s27 + $0x30] sm:$0x1]  ;;  %vm1388_vm7 = vcmask 261120  }
  0x41   : > { %476 = vadd.xlane.f32.xlu0 %v475_v18 }
  0x42   : > { %491 = vadd.xlane.f32.xlu2 %v490_v17  ;;  %482 = vadd.xlane.f32.xlu1 %v481_v19 }
  0x49   : > { %485 = vadd.xlane.f32.xlu0 %v484_v22 }
  0x5a   : > { %3287 = vrot.lane.b32.xlu2 %v3286_v27, %s3589_s30 }
  0x5b   : > { %3282 = vrot.lane.b32.xlu1 %v3281_v30, %s3589_s30  ;;  %v461_v30 = vld [vmem:[%s3734_s27 + $0x28] sm:$0xff] }
  0x5d   : > { %3292 = vrot.lane.b32.xlu0 %v3291_v31, %s3589_s30  ;;  %v460_v31 = vld [vmem:[%s3734_s27 + $0x20] sm:$0xff] }
  0x62   : > { %576 = vrot.lane.b32.xlu2 %v561_v32, %s3589_s30 }
  0xac   : > { %v496_v33 = vpop.xlane.xlu0 %495 }
  0xad   : > { %v489_v34 = vpop.xlane.xlu2 %488  ;;  %v480_v35 = vpop.xlane.xlu1 %479  ;;  %v500_v41 = vsel %vm499_vm4, %v496_v33, -inf }
  0xb4   : > { %v477_v36 = vpop.xlane.xlu0 %476 }
  0xb5   : > { %v492_v37 = vpop.xlane.xlu2 %491  ;;  %v483_v38 = vpop.xlane.xlu1 %482  ;;  %v497_v40 = vmax.f32 %v477_v36, %v489_v34 }
  0xb6   : > { %v498_v39 = vmax.f32 %v480_v35, %v492_v37  ;;  %v501_v42 = vmax.f32 %v483_v38, %v500_v41 }
  0xb8   : > { %v502_v44 = vmax.f32 %v497_v40, %v498_v39 }
  0xbc   : > { %v486_v43 = vpop.xlane.xlu0 %485 }
  0xbd   : > { %v503_v45 = vmax.f32 %v501_v42, %v486_v43  ;;  %v3288_v32 = vpop.permute.xlu2 %3287 }
  0xbf   : > { %v504_v46 = vmax.f32 %v502_v44, %v503_v45  ;;  %v458_v44 = vld [vmem:[%s3734_s27 + $0x10] sm:$0xff] }
  0xc1   : > { %v505_v47 = vrot.slane %v504_v46, 4 }
  0xc3   : > { %v506_v48 = vmax.f32 %v504_v46, %v505_v47  ;;  %v459_v46 = vld [vmem:[%s3734_s27 + $0x18] sm:$0xff]  ;;  %v3290_v47 = vunpack.i.h.bf16 %v3288_v32 }
  0xc5   : > { %v507_v49 = vrot.slane %v506_v48, 2 }
  0xc7   : > { %v508_v50 = vmax.f32 %v506_v48, %v507_v49 }
  0xc9   : > { %v509_v51 = vrot.slane %v508_v50, 1 }
  0xcb   : > { %v510_v52 = vmax.f32 %v508_v50, %v509_v51 }
  0xcd   : > { %v511_v53 = vsub.f32 %v477_v36, %v510_v52  ;;  %v512_v54 = vsub.f32 %v480_v35, %v510_v52  ;;  %v513_v55 = vsub.f32 %v483_v38, %v510_v52  ;;  %v514_v56 = vsub.f32 %v486_v43, %v510_v52  ;;  %v3283_v23 = vpop.permute.xlu1 %3282 }
  0xce   : > { %v515_v59 = vsub.f32 %v489_v34, %v510_v52  ;;  %v517_v61 = vsub.f32 %v496_v33, %v510_v52  ;;  %v516_v62 = vsub.f32 %v492_v37, %v510_v52  ;;  %v3284_v27 = vunpack.i.l.bf16 %v3283_v23 }
  0xcf   : > { %v518_v57 = vmul.f32 1.442695, %v511_v53  ;;  %v520_v58 = vmul.f32 1.442695, %v512_v54  ;;  %v522_v60 = vmul.f32 1.442695, %v513_v55  ;;  %v3289_v37 = vunpack.i.l.bf16 %v3288_v32  ;;  %v3293_v43 = vpop.permute.xlu0 %3292 }
  0xd0   : > { %v524_v63 = vmul.f32 1.442695, %v514_v56  ;;  %v526_v0 = vmul.f32 1.442695, %v515_v59  ;;  %v530_v1 = vmul.f32 1.442695, %v517_v61  ;;  %v3285_v38 = vunpack.i.h.bf16 %v3283_v23 }
  0xd1   : > { %3388 = vpow2.f32 %v518_v57  ;;  %v528_v2 = vmul.f32 1.442695, %v516_v62  ;;  %v3590_v34 = vmov 0   ;;  %v3294_v49 = vunpack.i.l.bf16 %v3293_v43  ;;  %v456_v56 = vld [vmem:[%s3734_s27] sm:$0xff]  ;;  %v457_v57 = vld [vmem:[%s3734_s27 + $0x8] sm:$0xff]  ;;  %v3132_v32 = vld [vmem:[%s4493_s3 + $0x94] sm:$0xff] }
  0xd2   : > { %3390 = vpow2.f32 %v520_v58  ;;  %v645_v35 = vsel %vm499_vm4, 65535, %v3590_v34  ;;  %v3295_v59 = vunpack.i.h.bf16 %v3293_v43  ;;  %v3138_v34 = vld [vmem:[%s4493_s3 + $0xcc] sm:$0xff] }
  0xd3   : > { %3392 = vpow2.f32 %v522_v60 }
  0xd4   : > { %3394 = vpow2.f32 %v524_v63 }
  0xd5   : > { %3396 = vpow2.f32 %v526_v0  ;;  %v577_v0 = vpop.permute.xlu2 %576 }
  0xd6   : > { %3398 = vpow2.f32 %v530_v1 }
  0xd7   : > { %v3389_v3 = vpop.eup %3388  ;;  %3400 = vpow2.f32 %v528_v2 }
  0xd8   : > { %v3391_v4 = vpop.eup %3390 }
  0xd9   : > { %v532_v5 = vadd.f32 %v3391_v4, %v3389_v3  ;;  %v3393_v6 = vpop.eup %3392 }
  0xda   : > { %v3395_v8 = vpop.eup %3394 }
  0xdb   : > { %v533_v7 = vadd.f32 %v3393_v6, %v532_v5  ;;  %v3397_v10 = vpop.eup %3396  ;;  %v3119_v5 = vld [vmem:[%s4493_s3 + $0x1c] sm:$0xff] }
  0xdc   : > { %v3399_v11 = vpop.eup %3398 }
  0xdd   : > { %v534_v9 = vadd.f32 %v3395_v8, %v533_v7  ;;  %v3401_v13 = vpop.eup %3400  ;;  %v537_v15 = vsel %vm499_vm4, %v3399_v11, 0.0  ;;  %v3125_v7 = vld [vmem:[%s4493_s3 + $0x54] sm:$0xff] }
  0xdf   : > { %v535_v12 = vadd.f32 %v3397_v10, %v534_v9  ;;  %v3120_v9 = vld [vmem:[%s4493_s3 + $0x24] sm:$0xff] }
  0xe1   : > { %v536_v14 = vadd.f32 %v3401_v13, %v535_v12  ;;  %v3121_v12 = vld [vmem:[%s4493_s3 + $0x2c] sm:$0xff] }
  0xe3   : > { %v538_v16 = vadd.f32 %v537_v15, %v536_v14  ;;  %v3127_v14 = vld [vmem:[%s4493_s3 + $0x64] sm:$0xff] }
  0xe4   : > { %v3117_v15 = vld [vmem:[%s4493_s3 + $0x8] sm:$0xff] }
  0xe5   : > { %v539_v17 = vrot.slane %v538_v16, 4 }
  0xe7   : > { %v540_v18 = vadd.f32 %v539_v17, %v538_v16  ;;  %v2707_v16 = vld [vmem:[%s4493_s3 + $0x34] sm:$0x1]  ;;  %v2730_v17 = vld [vmem:[%s4493_s3 + $0x50] sm:$0x1] }
  0xe9   : > { %v541_v19 = vrot.slane %v540_v18, 2 }
  0xeb   : > { %v542_v20 = vadd.f32 %v541_v19, %v540_v18  ;;  %v2753_v18 = vld [vmem:[%s4493_s3 + $0x6c] sm:$0x1]  ;;  %v698_v19 = vunpack.c.l.b16 %v2707_v16 }
  0xed   : > { %v543_v21 = vrot.slane %v542_v20, 1 }
  0xef   : > { %v544_v22 = vadd.f32 %v543_v21, %v542_v20  ;;  %v764_v20 = vunpack.c.l.b16 %v2730_v17  ;;  %v830_v21 = vunpack.c.l.b16 %v2753_v18 }
  0xf1   : > { %3402 = vrcp.f32 %v544_v22  ;;  %v702_v22 = vpack.c.b16 %v698_v19, %v698_v19  ;;  %v768_v23 = vpack.c.b16 %v764_v20, %v764_v20 }
  0xf7   : > { %v3403_v24 = vpop.eup %3402 }
  0xf8   : > { %v551_v26 = vmul.f32 %v3403_v24, %v3401_v13  ;;  %v550_v28 = vmul.f32 %v3403_v24, %v3397_v10  ;;  %v552_v29 = vmul.f32 %v3403_v24, %v3399_v11  ;;  %v549_v36 = vmul.f32 %v3403_v24, %v3395_v8  ;;  %v3116_v8 = vld [vmem:[%s4493_s3] sm:$0xff]  ;;  %v3124_v13 = vld [vmem:[%s4493_s3 + $0x48] sm:$0xff] }
  0xf9   : > { %v548_v39 = vmul.f32 %v3403_v24, %v3393_v6  ;;  %v546_v50 = vmul.f32 %v3403_v24, %v3389_v3  ;;  %v547_v51 = vmul.f32 %v3403_v24, %v3391_v4  ;;  %v3122_v6 = vld [vmem:[%s4493_s3 + $0x38] sm:$0xff]  ;;  %v3123_v10 = vld [vmem:[%s4493_s3 + $0x40] sm:$0xff]  ;;  %v834_v24 = vpack.c.b16 %v830_v21, %v830_v21 }
  0xfa   : > { %v559_v33 = vmul.f32 %v552_v29, %v462_v25  ;;  %v558_v40 = vmul.f32 %v551_v26, %v461_v30  ;;  %v557_v41 = vmul.f32 %v550_v28, %v460_v31  ;;  %v556_v55 = vmul.f32 %v549_v36, %v459_v46  ;;  %v3126_v11 = vld [vmem:[%s4493_s3 + $0x5c] sm:$0xff]  ;;  %v3118_v25 = vld [vmem:[%s4493_s3 + $0x10] sm:$0xff]  ;;  %v3137_v28 = vld [vmem:[%s4493_s3 + $0xc4] sm:$0xff] }
  0xfb   : > { %v555_v52 = vmul.f32 %v548_v39, %v458_v44  ;;  %v553_v62 = vmul.f32 %v546_v50, %v456_v56  ;;  %v554_v63 = vmul.f32 %v547_v51, %v457_v57  ;;  %v3131_v26 = vld [vmem:[%s4493_s3 + $0x8c] sm:$0xff]  ;;  %v612_v29 = vld [vmem:[%s4493_s3 + $0x18] sm:$0x1]  ;;  %v2799_v39 = vld [vmem:[%s4493_s3 + $0xa4] sm:$0x1] }
  0xfc   : > { %v601_v42 = vsel %vm474_vm3, %v559_v33, %v3284_v27  ;;  %v600_v53 = vsel %vm474_vm3, %v558_v40, %v3289_v37  ;;  %v599_v54 = vsel %vm474_vm3, %v557_v41, %v3285_v38  ;;  %v598_v61 = vsel %vm474_vm3, %v556_v55, %v3294_v49  ;;  %v3134_v27 = vld [vmem:[%s4493_s3 + $0xa8] sm:$0xff]  ;;  %v3135_v33 = vld [vmem:[%s4493_s3 + $0xb0] sm:$0xff]  ;;  %v3136_v36 = vld [vmem:[%s4493_s3 + $0xb8] sm:$0xff] }
  0xfd   : > { %v605_v45 = vpack.c.bf16 %v601_v42, %v601_v42  ;;  %v604_v58 = vpack.c.bf16 %v600_v53, %v599_v54  ;;  %v597_v60 = vsel %vm474_vm3, %v555_v52, %v3290_v47  ;;  %v595_v2 = vsel %vm474_vm3, %v553_v62, %v3295_v59  ;;  %v3139_v37 = vld [vmem:[%s4493_s3 + $0xd4] sm:$0xff]  ;;  %v2822_v40 = vld [vmem:[%s4493_s3 + $0xc0] sm:$0x1]  ;;  %v2845_v41 = vld [vmem:[%s4493_s3 + $0xdc] sm:$0x1] }
  0xfe   : > { %v603_v1 = vpack.c.bf16 %v598_v61, %v597_v60  ;;  %v596_v3 = vsel %vm474_vm3, %v554_v63, %v577_v0  ;;  %v626_v30 = vunpack.c.l.b16 %v612_v29  ;;  %v3128_v38 = vld [vmem:[%s4493_s3 + $0x70] sm:$0xff]  ;;  %v962_v42 = vunpack.c.l.b16 %v2799_v39  ;;  %v3130_v50 = vld [vmem:[%s4493_s3 + $0x80] sm:$0xff]  ;;  %v2776_v60 = vld [vmem:[%s4493_s3 + $0x88] sm:$0x1] }
  0xff   : > { %v647_v48 = vand.u32 %v645_v35, %v605_v45  ;;  %v602_v4 = vpack.c.bf16 %v596_v3, %v595_v2  ;;  %v3133_v35 = vld [vmem:[%s4493_s3 + $0x9c] sm:$0xff]  ;;  %v1028_v43 = vunpack.c.l.b16 %v2822_v40  ;;  %v1094_v44 = vunpack.c.l.b16 %v2845_v41  ;;  %v3157_v29 = vld [vmem:[%s4494_s4 + $0x70] sm:$0xff]  ;;  %v3148_v39 = vld [vmem:[%s4494_s4 + $0x28] sm:$0xff] }
 0x100   : > { %v630_v31 = vpack.c.b16 %v626_v30, %v626_v30  ;;  %v966_v45 = vpack.c.b16 %v962_v42, %v962_v42  ;;  %v896_v61 = vunpack.c.l.b16 %v2776_v60  ;;  %v3158_v21 = vld [vmem:[%s4494_s4 + $0x78] sm:$0xff]  ;;  %v3165_v30 = vld [vmem:[%s4494_s4 + $0xb0] sm:$0xff] }
 0x101   : > { %653 = vmatpush.bf16.msra.mxu0 %v647_v48  ;;  %719 = vmatpush.bf16.msra.mxu1 %v647_v48  ;;  %v1032_v46 = vpack.c.b16 %v1028_v43, %v1028_v43  ;;  %v1098_v47 = vpack.c.b16 %v1094_v44, %v1094_v44 }
 0x102   : > { %785 = vmatpush.bf16.msra.mxu2 %v647_v48  ;;  %851 = vmatpush.bf16.msra.mxu3 %v647_v48  ;;  %v900_v62 = vpack.c.b16 %v896_v61, %v896_v61 }
 0x105   : > { %654 = vmatpush.bf16.msra.mxu0 %v604_v58  ;;  %720 = vmatpush.bf16.msra.mxu1 %v604_v58 }
 0x106   : > { %786 = vmatpush.bf16.msra.mxu2 %v604_v58  ;;  %852 = vmatpush.bf16.msra.mxu3 %v604_v58 }
 0x109   : > { %655 = vmatpush.bf16.msra.mxu0 %v603_v1  ;;  %721 = vmatpush.bf16.msra.mxu1 %v603_v1 }
 0x10a   : > { %787 = vmatpush.bf16.msra.mxu2 %v603_v1  ;;  %853 = vmatpush.bf16.msra.mxu3 %v603_v1 }
 0x10d   : > { %656 = vmatpush.bf16.msra.mxu0 %v602_v4  ;;  %722 = vmatpush.bf16.msra.mxu1 %v602_v4 }
 0x10e   : > { %788 = vmatpush.bf16.msra.mxu2 %v602_v4  ;;  %854 = vmatpush.bf16.msra.mxu3 %v602_v4 }
 0x110   : > { %2720 = vmatmul.msk.bf16.vlgmr.msra.gmra.mxu1 %vm631_vm5, %v3119_v5  ;;  %2697 = vmatmul.msk.bf16.vlgmr.msra.gmra.mxu0 %vm631_vm5, %v3116_v8 }
 0x111   : > { %917 = vmatpush.bf16.msrb.mxu0 %v647_v48  ;;  %983 = vmatpush.bf16.msrb.mxu1 %v647_v48 }
 0x112   : > { %1049 = vmatpush.bf16.msrb.mxu2 %v647_v48  ;;  %1115 = vmatpush.bf16.msrb.mxu3 %v647_v48 }
 0x113   : > { %2743 = vmatmul.msk.bf16.vlgmr.msra.gmra.mxu2 %vm631_vm5, %v3122_v6  ;;  %2766 = vmatmul.msk.bf16.vlgmr.msra.gmra.mxu3 %vm631_vm5, %v3125_v7 }
 0x115   : > { %918 = vmatpush.bf16.msrb.mxu0 %v604_v58  ;;  %984 = vmatpush.bf16.msrb.mxu1 %v604_v58 }
 0x116   : > { %1050 = vmatpush.bf16.msrb.mxu2 %v604_v58  ;;  %1116 = vmatpush.bf16.msrb.mxu3 %v604_v58 }
 0x119   : > { %919 = vmatpush.bf16.msrb.mxu0 %v603_v1  ;;  %985 = vmatpush.bf16.msrb.mxu1 %v603_v1 }
 0x11a   : > { %1051 = vmatpush.bf16.msrb.mxu2 %v603_v1  ;;  %1117 = vmatpush.bf16.msrb.mxu3 %v603_v1 }
 0x11d   : > { %920 = vmatpush.bf16.msrb.mxu0 %v602_v4  ;;  %986 = vmatpush.bf16.msrb.mxu1 %v602_v4 }
 0x11e   : > { %1052 = vmatpush.bf16.msrb.mxu2 %v602_v4  ;;  %1118 = vmatpush.bf16.msrb.mxu3 %v602_v4 }
 0x120   : > { %2721 = vmatmul.msk.bf16.gmra.mxu1 %vm631_vm5, %v3120_v9  ;;  %2698 = vmatmul.msk.bf16.gmra.mxu0 %vm631_vm5, %v3117_v15  ;;  %v3140_v9 = vld [vmem:[%s4493_s3 + $0xe0] sm:$0xff] }
 0x121   : > { %1181 = vmatpush.bf16.msra.mxu0 %v647_v48  ;;  %v3129_v48 = vld [vmem:[%s4493_s3 + $0x78] sm:$0xff] }
 0x122   : > { %1921 = vmatpush.bf16.msra.mxu2 %v3158_v21 }
 0x123   : > { %2744 = vmatmul.msk.bf16.gmra.mxu2 %vm631_vm5, %v3123_v10  ;;  %2767 = vmatmul.msk.bf16.gmra.mxu3 %vm631_vm5, %v3126_v11 }
 0x125   : > { %1182 = vmatpush.bf16.msra.mxu0 %v604_v58 }
 0x126   : > { %1922 = vmatpush.bf16.msra.mxu2 %v3157_v29 }
 0x129   : > { %1183 = vmatpush.bf16.msra.mxu0 %v603_v1 }
 0x12d   : > { %1184 = vmatpush.bf16.msra.mxu0 %v602_v4 }
 0x130   : > { %2722 = vmatmul.msk.bf16.gmra.mxu1 %vm631_vm5, %v3121_v12  ;;  %2699 = vmatmul.msk.bf16.gmra.mxu0 %vm631_vm5, %v3118_v25 }
 0x133   : > { %2745 = vmatmul.msk.bf16.gmra.mxu2 %vm631_vm5, %v3124_v13  ;;  %2768 = vmatmul.msk.bf16.gmra.mxu3 %vm631_vm5, %v3127_v14 }
 0x140   : > { %2723 = vmatmul.msk.bf16.gmra.mxu1 %vm631_vm5, %v702_v22  ;;  %2700 = vmatmul.msk.bf16.gmra.mxu0 %vm631_vm5, %v630_v31  ;;  %v3141_v22 = vld [vmem:[%s4493_s3 + $0xe8] sm:$0xff]  ;;  %v3149_v31 = vld [vmem:[%s4494_s4 + $0x30] sm:$0xff] }
 0x143   : > { %2746 = vmatmul.msk.bf16.gmra.mxu2 %vm631_vm5, %v768_v23  ;;  %2769 = vmatmul.msk.bf16.gmra.mxu3 %vm631_vm5, %v834_v24  ;;  %v3166_v23 = vld [vmem:[%s4494_s4 + $0xb8] sm:$0xff] }
 0x144   : > { %v3150_v24 = vld [vmem:[%s4494_s4 + $0x38] sm:$0xff]  ;;  %1949 = vmatpush.bf16.msra.mxu3 %v3166_v23 }
 0x145   : > { %1893 = vmatpush.bf16.msra.mxu1 %v3150_v24  ;;  %v3174_v24 = vld [vmem:[%s4494_s4 + $0xf8] sm:$0xff] }
 0x148   : > { %1950 = vmatpush.bf16.msra.mxu3 %v3165_v30  ;;  %v3173_v30 = vld [vmem:[%s4494_s4 + $0xf0] sm:$0xff] }
 0x149   : > { %1894 = vmatpush.bf16.msra.mxu1 %v3149_v31 }
 0x14d   : > { %1895 = vmatpush.bf16.msra.mxu1 %v3148_v39 }
 0x150   : > { %2812 = vmatmul.msk.bf16.vlgmr.msrb.gmra.mxu1 %vm631_vm5, %v3131_v26  ;;  %2789 = vmatmul.msk.bf16.vlgmr.msrb.gmra.mxu0 %vm631_vm5, %v3128_v38  ;;  %v3164_v38 = vld [vmem:[%s4494_s4 + $0xa8] sm:$0xff] }
 0x151   : > { %1951 = vmatpush.bf16.msra.mxu3 %v3164_v38  ;;  %1977 = vmatpush.bf16.msrb.mxu0 %v3174_v24 }
 0x153   : > { %2835 = vmatmul.msk.bf16.vlgmr.msrb.gmra.mxu2 %vm631_vm5, %v3134_v27  ;;  %2858 = vmatmul.msk.bf16.vlgmr.msrb.gmra.mxu3 %vm631_vm5, %v3137_v28 }
 0x155   : > { %1978 = vmatpush.bf16.msrb.mxu0 %v3173_v30 }
 0x160   : > { %2813 = vmatmul.msk.bf16.gmra.mxu1 %vm631_vm5, %v3132_v32  ;;  %2790 = vmatmul.msk.bf16.gmra.mxu0 %vm631_vm5, %v3129_v48  ;;  %v3147_v48 = vld [vmem:[%s4494_s4 + $0x20] sm:$0xff] }
 0x161   : > { %1896 = vmatpush.bf16.msra.mxu1 %v3147_v48 }
 0x163   : > { %2836 = vmatmul.msk.bf16.gmra.mxu2 %vm631_vm5, %v3135_v33  ;;  %2859 = vmatmul.msk.bf16.gmra.mxu3 %vm631_vm5, %v3138_v34 }
 0x170   : > { %2814 = vmatmul.msk.bf16.gmra.mxu1 %vm631_vm5, %v3133_v35  ;;  %2791 = vmatmul.msk.bf16.gmra.mxu0 %vm631_vm5, %v3130_v50 }
 0x173   : > { %2837 = vmatmul.msk.bf16.gmra.mxu2 %vm631_vm5, %v3136_v36  ;;  %2860 = vmatmul.msk.bf16.gmra.mxu3 %vm631_vm5, %v3139_v37  ;;  %v3156_v36 = vld [vmem:[%s4494_s4 + $0x68] sm:$0xff]  ;;  %v3142_v37 = vld [vmem:[%s4493_s3 + $0xf0] sm:$0xff] }
 0x174   : > { %1923 = vmatpush.bf16.msra.mxu2 %v3156_v36  ;;  %v3172_v36 = vld [vmem:[%s4494_s4 + $0xe8] sm:$0xff] }
 0x175   : > { %1979 = vmatpush.bf16.msrb.mxu0 %v3172_v36 }
 0x180   : > { %2815 = vmatmul.msk.bf16.gmra.mxu1 %vm631_vm5, %v966_v45  ;;  %2792 = vmatmul.msk.bf16.gmra.mxu0 %vm631_vm5, %v900_v62 }
 0x183   : > { %2838 = vmatmul.msk.bf16.gmra.mxu2 %vm631_vm5, %v1032_v46  ;;  %2861 = vmatmul.msk.bf16.gmra.mxu3 %vm631_vm5, %v1098_v47  ;;  %v3155_v46 = vld [vmem:[%s4494_s4 + $0x60] sm:$0xff] }
 0x184   : > { %v3163_v47 = vld [vmem:[%s4494_s4 + $0xa0] sm:$0xff]  ;;  %1924 = vmatpush.bf16.msra.mxu2 %v3155_v46  ;;  %v3181_v46 = vld [vmem:[%s4494_s4 + $0x130] sm:$0xff] }
 0x185   : > { %1952 = vmatpush.bf16.msra.mxu3 %v3163_v47 }
 0x18d   : > { %v724_v49 = vpop.f32.mrf.mxu1  ;;  %v3905_v8 = vpop.f32.mrf.mxu0 }
 0x190   : > { %2881 = vmatmul.msk.bf16.vlgmr.msra.gmra.mxu0 %vm631_vm5, %v3140_v9 }
 0x195   : > { %v726_v53 = vpop.f32.mrf.mxu1  ;;  %v3913_v13 = vpop.f32.mrf.mxu0 }
 0x196   : > { %v790_v51 = vpop.f32.mrf.mxu2  ;;  %v856_v52 = vpop.f32.mrf.mxu3  ;;  %v3296_v54 = vpack.i.bf16 %v726_v53, %v724_v49 }
 0x198   : > { %3297 = vrot.lane.b32.xlu1 %v3296_v54, %s3591_s22  ;;  %v3154_v54 = vld [vmem:[%s4494_s4 + $0x58] sm:$0xff] }
 0x199   : > { %1925 = vmatpush.bf16.msra.mxu2 %v3154_v54 }
 0x19d   : > { %v729_v59 = vpop.f32.mrf.mxu1  ;;  %v3916_v20 = vpop.f32.mrf.mxu0 }
 0x19e   : > { %v792_v55 = vpop.f32.mrf.mxu2  ;;  %v858_v57 = vpop.f32.mrf.mxu3 }
 0x19f   : > { %v3301_v56 = vpack.i.bf16 %v792_v55, %v790_v51  ;;  %v3306_v58 = vpack.i.bf16 %v858_v57, %v856_v52  ;;  %v3162_v55 = vld [vmem:[%s4494_s4 + $0x98] sm:$0xff]  ;;  %v3153_v57 = vld [vmem:[%s4494_s4 + $0x50] sm:$0xff] }
 0x1a0   : > { %2882 = vmatmul.msk.bf16.gmra.mxu0 %vm631_vm5, %v3141_v22  ;;  %1953 = vmatpush.bf16.msra.mxu3 %v3162_v55  ;;  %v3169_v55 = vld [vmem:[%s4494_s4 + $0xd0] sm:$0xff] }
 0x1a1   : > { %3302 = vrot.lane.b32.xlu0 %v3301_v56, %s3589_s30  ;;  %3307 = vrot.lane.b32.xlu2 %v3306_v58, %s3592_s17  ;;  %v3146_v56 = vld [vmem:[%s4494_s4 + $0x18] sm:$0xff]  ;;  %v3161_v58 = vld [vmem:[%s4494_s4 + $0x90] sm:$0xff] }
 0x1a2   : > { %1897 = vmatpush.bf16.msra.mxu1 %v3146_v56  ;;  %1926 = vmatpush.bf16.msra.mxu2 %v3153_v57 }
 0x1a4   : > { %1954 = vmatpush.bf16.msra.mxu3 %v3161_v58 }
 0x1a5   : > { %v731_v1 = vpop.f32.mrf.mxu1  ;;  %v3934_v28 = vpop.f32.mrf.mxu0 }
 0x1a6   : > { %v795_v63 = vpop.f32.mrf.mxu2  ;;  %v861_v0 = vpop.f32.mrf.mxu3  ;;  %v3311_v2 = vpack.i.bf16 %v731_v1, %v729_v59  ;;  %v3145_v59 = vld [vmem:[%s4494_s4 + $0x10] sm:$0xff] }
 0x1a7   : > { %1898 = vmatpush.bf16.msra.mxu1 %v3145_v59 }
 0x1a8   : > { %3312 = vrot.lane.b32.xlu1 %v3311_v2, %s3591_s22  ;;  %v2868_v2 = vld [vmem:[%s4493_s3 + $0xf8] sm:$0x1] }
 0x1ad   : > { %v734_v7 = vpop.f32.mrf.mxu1  ;;  %v3946_v35 = vpop.f32.mrf.mxu0 }
 0x1ae   : > { %v797_v3 = vpop.f32.mrf.mxu2  ;;  %v863_v4 = vpop.f32.mrf.mxu3 }
 0x1af   : > { %v3316_v5 = vpack.i.bf16 %v797_v3, %v795_v63  ;;  %v3321_v6 = vpack.i.bf16 %v863_v4, %v861_v0  ;;  %v1160_v3 = vunpack.c.l.b16 %v2868_v2 }
 0x1b0   : > { %2883 = vmatmul.msk.bf16.gmra.mxu0 %vm631_vm5, %v3142_v37  ;;  %v3182_v37 = vld [vmem:[%s4494_s4 + $0x138] sm:$0xff] }
 0x1b1   : > { %3322 = vrot.lane.b32.xlu2 %v3321_v6, %s3592_s17  ;;  %3317 = vrot.lane.b32.xlu0 %v3316_v5, %s3589_s30  ;;  %v1164_v4 = vpack.c.b16 %v1160_v3, %v1160_v3  ;;  %v3144_v5 = vld [vmem:[%s4494_s4 + $0x8] sm:$0xff] }
 0x1b2   : > { %1899 = vmatpush.bf16.msra.mxu1 %v3144_v5 }
 0x1b5   : > { %v736_v12 = vpop.f32.mrf.mxu1  ;;  %v3961_v44 = vpop.f32.mrf.mxu0 }
 0x1b6   : > { %v800_v10 = vpop.f32.mrf.mxu2  ;;  %v866_v11 = vpop.f32.mrf.mxu3  ;;  %v3326_v14 = vpack.i.bf16 %v736_v12, %v734_v7  ;;  %v3143_v12 = vld [vmem:[%s4494_s4] sm:$0xff] }
 0x1b7   : > { %1900 = vmatpush.bf16.msra.mxu1 %v3143_v12  ;;  %v3187_v12 = vld [vmem:[%s4494_s4 + $0x160] sm:$0xff] }
 0x1b8   : > { %3327 = vrot.lane.b32.xlu1 %v3326_v14, %s3591_s22  ;;  %v3152_v14 = vld [vmem:[%s4494_s4 + $0x48] sm:$0xff] }
 0x1b9   : > { %1927 = vmatpush.bf16.msra.mxu2 %v3152_v14  ;;  %v3194_v14 = vld [vmem:[%s4494_s4 + $0x198] sm:$0xff] }
 0x1bb   : > { %2005 = vmatpush.bf16.msrb.mxu1 %v3182_v37 }
 0x1bd   : > { %v739_v19 = vpop.f32.mrf.mxu1  ;;  %v3974_v53 = vpop.f32.mrf.mxu0 }
 0x1be   : > { %v802_v15 = vpop.f32.mrf.mxu2  ;;  %v868_v16 = vpop.f32.mrf.mxu3 }
 0x1bf   : > { %v3331_v17 = vpack.i.bf16 %v802_v15, %v800_v10  ;;  %v3336_v18 = vpack.i.bf16 %v868_v16, %v866_v11  ;;  %v3160_v15 = vld [vmem:[%s4494_s4 + $0x88] sm:$0xff]  ;;  %2006 = vmatpush.bf16.msrb.mxu1 %v3181_v46 }
 0x1c0   : > { %1224 = vrot.lane.b32.xlu1 %v739_v19, %s3591_s22  ;;  %2884 = vmatmul.msk.bf16.gmra.mxu0 %vm631_vm5, %v1164_v4  ;;  %v3159_v19 = vld [vmem:[%s4494_s4 + $0x80] sm:$0xff] }
 0x1c1   : > { %3337 = vrot.lane.b32.xlu2 %v3336_v18, %s3592_s17  ;;  %3332 = vrot.lane.b32.xlu0 %v3331_v17, %s3589_s30  ;;  %v3151_v18 = vld [vmem:[%s4494_s4 + $0x40] sm:$0xff] }
 0x1c2   : > { %1955 = vmatpush.bf16.msra.mxu3 %v3160_v15  ;;  %1928 = vmatpush.bf16.msra.mxu2 %v3151_v18  ;;  %v3179_v15 = vld [vmem:[%s4494_s4 + $0x120] sm:$0xff] }
 0x1c5   : > { %v741_v27 = vpop.f32.mrf.mxu1  ;;  %v675_v0 = vpop.f32.mrf.mxu0 }
 0x1c6   : > { %v805_v25 = vpop.f32.mrf.mxu2  ;;  %v871_v26 = vpop.f32.mrf.mxu3  ;;  %1956 = vmatpush.bf16.msra.mxu3 %v3159_v19 }
 0x1c9   : > { %1280 = vrot.lane.b32.xlu2 %v871_v26, %s3592_s17  ;;  %v3196_v26 = vld [vmem:[%s4494_s4 + $0x1a8] sm:$0xff] }
 0x1ca   : > { %2063 = vmatpush.bf16.msrb.mxu3 %v3196_v26 }
 0x1cd   : > { %v988_v34 = vpop.f32.mrf.mxu1  ;;  %v4004_v11 = vpop.f32.mrf.mxu0 }
 0x1ce   : > { %v807_v32 = vpop.f32.mrf.mxu2  ;;  %v873_v33 = vpop.f32.mrf.mxu3 }
 0x1d5   : > { %v990_v43 = vpop.f32.mrf.mxu1  ;;  %v4023_v23 = vpop.f32.mrf.mxu0 }
 0x1d6   : > { %v1054_v40 = vpop.f32.mrf.mxu2  ;;  %v1120_v41 = vpop.f32.mrf.mxu3  ;;  %v3356_v45 = vpack.i.bf16 %v990_v43, %v988_v34  ;;  %v3189_v43 = vld [vmem:[%s4494_s4 + $0x170] sm:$0xff] }
 0x1d7   : > { %v3341_v42 = vpack.i.bf16 %v1054_v40, %v805_v25  ;;  %v3190_v25 = vld [vmem:[%s4494_s4 + $0x178] sm:$0xff]  ;;  %v3171_v40 = vld [vmem:[%s4494_s4 + $0xe0] sm:$0xff] }
 0x1d8   : > { %3357 = vrot.lane.b32.xlu2 %v3356_v45, %s3591_s22  ;;  %2033 = vmatpush.bf16.msrb.mxu2 %v3190_v25  ;;  %v3170_v45 = vld [vmem:[%s4494_s4 + $0xd8] sm:$0xff] }
 0x1d9   : > { %3342 = vrot.lane.b32.xlu0 %v3341_v42, %s3589_s30  ;;  %1980 = vmatpush.bf16.msrb.mxu0 %v3171_v40 }
 0x1dc   : > { %2034 = vmatpush.bf16.msrb.mxu2 %v3189_v43 }
 0x1dd   : > { %v993_v52 = vpop.f32.mrf.mxu1  ;;  %v4040_v34 = vpop.f32.mrf.mxu0  ;;  %1981 = vmatpush.bf16.msrb.mxu0 %v3170_v45 }
 0x1de   : > { %v1056_v49 = vpop.f32.mrf.mxu2  ;;  %v1122_v50 = vpop.f32.mrf.mxu3 }
 0x1df   : > { %v3351_v51 = vpack.i.bf16 %v1122_v50, %v1120_v41  ;;  %v3195_v50 = vld [vmem:[%s4494_s4 + $0x1a0] sm:$0xff] }
 0x1e0   : > { %2064 = vmatpush.bf16.msrb.mxu3 %v3195_v50  ;;  %v3177_v50 = vld [vmem:[%s4494_s4 + $0x110] sm:$0xff] }
 0x1e1   : > { %3352 = vrot.lane.b32.xlu0 %v3351_v51, %s3592_s17  ;;  %v3188_v51 = vld [vmem:[%s4494_s4 + $0x168] sm:$0xff]  ;;  %1982 = vmatpush.bf16.msrb.mxu0 %v3169_v55 }
 0x1e2   : > { %2035 = vmatpush.bf16.msrb.mxu2 %v3188_v51  ;;  %v3192_v51 = vld [vmem:[%s4494_s4 + $0x188] sm:$0xff] }
 0x1e4   : > { %2065 = vmatpush.bf16.msrb.mxu3 %v3194_v14 }
 0x1e5   : > { %v995_v63 = vpop.f32.mrf.mxu1  ;;  %v4054_v42 = vpop.f32.mrf.mxu0 }
 0x1e6   : > { %v1059_v60 = vpop.f32.mrf.mxu2  ;;  %v1125_v61 = vpop.f32.mrf.mxu3  ;;  %v3366_v1 = vpack.i.bf16 %v995_v63, %v993_v52  ;;  %2036 = vmatpush.bf16.msrb.mxu2 %v3187_v12 }
 0x1e7   : > { %v3346_v62 = vpack.i.bf16 %v1059_v60, %v1056_v49 }
 0x1e8   : > { %3367 = vrot.lane.b32.xlu2 %v3366_v1, %s3591_s22 }
 0x1e9   : > { %3347 = vrot.lane.b32.xlu1 %v3346_v62, %s3589_s30 }
 0x1ed   : > { %v998_v10 = vpop.f32.mrf.mxu1  ;;  %v4078_v60 = vpop.f32.mrf.mxu0 }
 0x1ee   : > { %v1061_v6 = vpop.f32.mrf.mxu2  ;;  %v1127_v7 = vpop.f32.mrf.mxu3 }
 0x1ef   : > { %v3361_v9 = vpack.i.bf16 %v1127_v7, %v1125_v61 }
 0x1f1   : > { %3362 = vrot.lane.b32.xlu0 %v3361_v9, %s3592_s17  ;;  %1330 = vrot.lane.b32.xlu1 %v1061_v6, %s3589_s30  ;;  %v3167_v9 = vld [vmem:[%s4494_s4 + $0xc0] sm:$0xff] }
 0x1f5   : > { %v1000_v21 = vpop.f32.mrf.mxu1 }
 0x1f6   : > { %v1064_v16 = vpop.f32.mrf.mxu2  ;;  %v1130_v17 = vpop.f32.mrf.mxu3  ;;  %v3381_v22 = vpack.i.bf16 %v1000_v21, %v998_v10 }
 0x1f7   : > { %v4093_v10 = vpop.f32.mrf.mxu0 }
 0x1f8   : > { %3382 = vrot.lane.b32.xlu2 %v3381_v22, %s3591_s22 }
 0x1fb   : > { %v3308_v58 = vpop.permute.xlu2 %3307 }
 0x1fc   : > { %v3310_v62 = vunpack.i.h.bf16 %v3308_v58  ;;  %v3309_v63 = vunpack.i.l.bf16 %v3308_v58 }
 0x1fd   : > { %v1003_v33 = vpop.f32.mrf.mxu1 }
 0x1fe   : > { %v1066_v27 = vpop.f32.mrf.mxu2  ;;  %v1132_v29 = vpop.f32.mrf.mxu3 }
 0x1ff   : > { %v3371_v31 = vpack.i.bf16 %v1066_v27, %v1064_v16  ;;  %v3376_v32 = vpack.i.bf16 %v1132_v29, %v1130_v17  ;;  %v3186_v16 = vld [vmem:[%s4494_s4 + $0x158] sm:$0xff]  ;;  %v4111_v26 = vpop.f32.mrf.mxu0  ;;  %v3193_v27 = vld [vmem:[%s4494_s4 + $0x190] sm:$0xff] }
 0x200   : > { %1308 = vrot.lane.b32.xlu2 %v1003_v33, %s3591_s22  ;;  %2037 = vmatpush.bf16.msrb.mxu2 %v3186_v16  ;;  %v3178_v29 = vld [vmem:[%s4494_s4 + $0x118] sm:$0xff] }
 0x201   : > { %3377 = vrot.lane.b32.xlu0 %v3376_v32, %s3592_s17  ;;  %3372 = vrot.lane.b32.xlu1 %v3371_v31, %s3589_s30 }
 0x202   : > { %2066 = vmatpush.bf16.msrb.mxu3 %v3193_v27 }
 0x205   : > { %v1005_v41 = vpop.f32.mrf.mxu1 }
 0x206   : > { %v1069_v38 = vpop.f32.mrf.mxu2  ;;  %v1135_v39 = vpop.f32.mrf.mxu3  ;;  %2067 = vmatpush.bf16.msrb.mxu3 %v3192_v51 }
 0x207   : > { %v939_v45 = vpop.f32.mrf.mxu0 }
 0x209   : > { %1364 = vrot.lane.b32.xlu0 %v1135_v39, %s3592_s17  ;;  %1336 = vrot.lane.b32.xlu1 %v1069_v38, %s3589_s30 }
 0x20a   : > { %v3298_v47 = vpop.permute.xlu1 %3297 }
 0x20b   : > { %v3300_v48 = vunpack.i.h.bf16 %v3298_v47  ;;  %v3299_v49 = vunpack.i.l.bf16 %v3298_v47  ;;  %v3323_v17 = vpop.permute.xlu2 %3322 }
 0x20c   : > { %v3325_v31 = vunpack.i.h.bf16 %v3323_v17  ;;  %v3324_v32 = vunpack.i.l.bf16 %v3323_v17 }
 0x20d   : > { %v1374_v56 = vsel %vm1373_vm6, %v3905_v8, %v3299_v49  ;;  %v1375_v57 = vsel %vm1373_vm6, %v3913_v13, %v3300_v48  ;;  %v3168_v8 = vld [vmem:[%s4494_s4 + $0xc8] sm:$0xff] }
 0x20e   : > { %v1071_v52 = vpop.f32.mrf.mxu2  ;;  %v1137_v54 = vpop.f32.mrf.mxu3  ;;  %v1417_v59 = vpack.c.bf16 %v1375_v57, %v1374_v56  ;;  %v3180_v13 = vld [vmem:[%s4494_s4 + $0x128] sm:$0xff]  ;;  %1983 = vmatpush.bf16.msrb.mxu0 %v3168_v8 }
 0x20f   : > { %2007 = vmatpush.bf16.msrb.mxu1 %v3180_v13  ;;  %v3184_v56 = vld [vmem:[%s4494_s4 + $0x148] sm:$0xff]  ;;  %v4139_v57 = vpop.f32.mrf.mxu0 }
 0x210   : > { %1901 = vmatmul.bf16.vlgmr.msra.gmra.mxu1 %v1417_v59 }
 0x212   : > { %1984 = vmatpush.bf16.msrb.mxu0 %v3167_v9 }
 0x213   : > { %v3303_v61 = vpop.permute.xlu0 %3302  ;;  %2008 = vmatpush.bf16.msrb.mxu1 %v3179_v15 }
 0x214   : > { %v3305_v0 = vunpack.i.h.bf16 %v3303_v61  ;;  %v3304_v1 = vunpack.i.l.bf16 %v3303_v61 }
 0x216   : > { %v1390_v2 = vsel %vm1388_vm7, %v3305_v0, %v3310_v62  ;;  %v1381_v3 = vsel %vm474_vm3, %v3299_v49, %v3304_v1  ;;  %v1382_v4 = vsel %vm474_vm3, %v3300_v48, %v3305_v0  ;;  %v1389_v5 = vsel %vm1388_vm7, %v3304_v1, %v3309_v63 }
 0x217   : > { %v1418_v6 = vpack.c.bf16 %v1382_v4, %v1381_v3  ;;  %v1419_v7 = vpack.c.bf16 %v1390_v2, %v1389_v5  ;;  %2009 = vmatpush.bf16.msrb.mxu1 %v3178_v29  ;;  %v3176_v3 = vld [vmem:[%s4494_s4 + $0x108] sm:$0xff]  ;;  %v3183_v4 = vld [vmem:[%s4494_s4 + $0x140] sm:$0xff]  ;;  %v1188_v16 = vpop.f32.mrf.mxu0 }
 0x218   : > { %v3191_v5 = vld [vmem:[%s4494_s4 + $0x180] sm:$0xff] }
 0x219   : > { %1929 = vmatmul.bf16.vlgmr.msra.gmra.mxu2 %v1418_v6  ;;  %1957 = vmatmul.bf16.vlgmr.msra.gmra.mxu3 %v1419_v7 }
 0x21a   : > { %v3313_v18 = vpop.permute.xlu1 %3312  ;;  %2068 = vmatpush.bf16.msrb.mxu3 %v3191_v5 }
 0x21b   : > { %v3315_v19 = vunpack.i.h.bf16 %v3313_v18  ;;  %v3314_v21 = vunpack.i.l.bf16 %v3313_v18  ;;  %2010 = vmatpush.bf16.msrb.mxu1 %v3177_v50 }
 0x21d   : > { %v1376_v22 = vsel %vm1373_vm6, %v3916_v20, %v3314_v21  ;;  %v1377_v24 = vsel %vm1373_vm6, %v3934_v28, %v3315_v19  ;;  %v3338_v20 = vpop.permute.xlu2 %3337  ;;  %v3185_v28 = vld [vmem:[%s4494_s4 + $0x150] sm:$0xff] }
 0x21e   : > { %v1424_v25 = vpack.c.bf16 %v1377_v24, %v1376_v22  ;;  %2038 = vmatpush.bf16.msrb.mxu2 %v3185_v28  ;;  %v3340_v59 = vunpack.i.h.bf16 %v3338_v20  ;;  %v3339_v61 = vunpack.i.l.bf16 %v3338_v20 }
 0x21f   : > { %2011 = vmatpush.bf16.msrb.mxu1 %v3176_v3 }
 0x220   : > { %1906 = vmatmul.bf16.gmra.mxu1 %v1424_v25 }
 0x222   : > { %2039 = vmatpush.bf16.msrb.mxu2 %v3184_v56 }
 0x223   : > { %v3318_v30 = vpop.permute.xlu0 %3317 }
 0x224   : > { %v3320_v33 = vunpack.i.h.bf16 %v3318_v30  ;;  %v3319_v36 = vunpack.i.l.bf16 %v3318_v30 }
 0x225   : > { %v1281_v46 = vpop.permute.xlu2 %1280 }
 0x226   : > { %v1383_v37 = vsel %vm474_vm3, %v3314_v21, %v3319_v36  ;;  %v1384_v38 = vsel %vm474_vm3, %v3315_v19, %v3320_v33  ;;  %v1391_v39 = vsel %vm1388_vm7, %v3319_v36, %v3324_v32  ;;  %v1392_v40 = vsel %vm1388_vm7, %v3320_v33, %v3325_v31  ;;  %2040 = vmatpush.bf16.msrb.mxu2 %v3183_v4  ;;  %v1191_v19 = vpop.f32.mrf.mxu0 }
 0x227   : > { %v1425_v41 = vpack.c.bf16 %v1384_v38, %v1383_v37  ;;  %v1426_v43 = vpack.c.bf16 %v1392_v40, %v1391_v39 }
 0x229   : > { %1934 = vmatmul.bf16.gmra.mxu2 %v1425_v41  ;;  %1962 = vmatmul.bf16.gmra.mxu3 %v1426_v43 }
 0x22a   : > { %v3328_v47 = vpop.permute.xlu1 %3327 }
 0x22b   : > { %v3330_v48 = vunpack.i.h.bf16 %v3328_v47  ;;  %v3329_v49 = vunpack.i.l.bf16 %v3328_v47 }
 0x22d   : > { %v1378_v52 = vsel %vm1373_vm6, %v3946_v35, %v3329_v49  ;;  %v1379_v54 = vsel %vm1373_vm6, %v3961_v44, %v3330_v48 }
 0x22e   : > { %v1431_v55 = vpack.c.bf16 %v1379_v54, %v1378_v52  ;;  %v1193_v32 = vpop.f32.mrf.mxu0 }
 0x22f   : > { %v1430_v3 = vpack.c.bf16 %v1193_v32, %v1191_v19 }
 0x230   : > { %1911 = vmatmul.bf16.gmra.mxu1 %v1431_v55 }
 0x232   : > { %v4141_v35 = vpop.permute.xlu2 %3357  ;;  %v1225_v15 = vpop.permute.xlu1 %1224 }
 0x233   : > { %v3333_v58 = vpop.permute.xlu0 %3332  ;;  %v3360_v44 = vunpack.i.h.bf16 %v4141_v35  ;;  %v3359_v0 = vunpack.i.l.bf16 %v4141_v35  ;;  %v1380_v17 = vsel %vm1373_vm6, %v3974_v53, %v1225_v15 }
 0x234   : > { %v3335_v62 = vunpack.i.h.bf16 %v3333_v58  ;;  %v3334_v63 = vunpack.i.l.bf16 %v3333_v58  ;;  %v1438_v18 = vpack.c.bf16 %v1380_v17, %v1380_v17 }
 0x235   : > { %v1396_v6 = vsel %vm1373_vm6, %v4004_v11, %v3359_v0  ;;  %v1397_v7 = vsel %vm1373_vm6, %v4023_v23, %v3360_v44  ;;  %v3175_v11 = vld [vmem:[%s4494_s4 + $0x100] sm:$0xff] }
 0x236   : > { %v1385_v1 = vsel %vm474_vm3, %v3329_v49, %v3334_v63  ;;  %v1386_v8 = vsel %vm474_vm3, %v3330_v48, %v3335_v62  ;;  %v1393_v13 = vsel %vm1388_vm7, %v3334_v63, %v3339_v61  ;;  %v1394_v2 = vsel %vm1388_vm7, %v3335_v62, %v3340_v59  ;;  %2012 = vmatpush.bf16.msrb.mxu1 %v3175_v11  ;;  %v1196_v40 = vpop.f32.mrf.mxu0 }
 0x237   : > { %v1432_v9 = vpack.c.bf16 %v1386_v8, %v1385_v1  ;;  %v1433_v12 = vpack.c.bf16 %v1394_v2, %v1393_v13  ;;  %v1420_v14 = vpack.c.bf16 %v1397_v7, %v1396_v6 }
 0x239   : > { %1939 = vmatmul.bf16.gmra.mxu2 %v1432_v9  ;;  %1967 = vmatmul.bf16.gmra.mxu3 %v1433_v12 }
 0x23a   : > { %1985 = vmatmul.bf16.vlgmr.msrb.gmra.mxu0 %v1420_v14 }
 0x23e   : > { %v1198_v55 = vpop.f32.mrf.mxu0 }
 0x240   : > { %1916 = vmatmul.bf16.gmra.mxu1 %v1438_v18 }
 0x242   : > { %v3368_v23 = vpop.permute.xlu2 %3367 }
 0x243   : > { %v3370_v21 = vunpack.i.h.bf16 %v3368_v23  ;;  %v3369_v22 = vunpack.i.l.bf16 %v3368_v23  ;;  %v1437_v23 = vpack.c.bf16 %v1198_v55, %v1196_v40 }
 0x245   : > { %v1398_v24 = vsel %vm1373_vm6, %v4040_v34, %v3369_v22  ;;  %v1399_v25 = vsel %vm1373_vm6, %v4054_v42, %v3370_v21 }
 0x246   : > { %v1427_v27 = vpack.c.bf16 %v1399_v25, %v1398_v24 }
 0x24a   : > { %1990 = vmatmul.bf16.gmra.mxu0 %v1427_v27 }
 0x24b   : > { %v3343_v53 = vpop.permute.xlu0 %3342 }
 0x24c   : > { %v3344_v29 = vunpack.i.l.bf16 %v3343_v53  ;;  %v3345_v41 = vunpack.i.h.bf16 %v3343_v53 }
 0x24e   : > { %v1387_v30 = vsel %vm474_vm3, %v1225_v15, %v3344_v29  ;;  %v1395_v31 = vsel %vm1388_vm7, %v3344_v29, %v1281_v46  ;;  %v1403_v48 = vsel %vm474_vm3, %v3359_v0, %v3345_v41 }
 0x24f   : > { %v1439_v20 = vpack.c.bf16 %v1387_v30, %v1387_v30  ;;  %v1440_v33 = vpack.c.bf16 %v1395_v31, %v1395_v31 }
 0x251   : > { %1944 = vmatmul.bf16.gmra.mxu2 %v1439_v20  ;;  %1972 = vmatmul.bf16.gmra.mxu3 %v1440_v33 }
 0x252   : > { %v3383_v36 = vpop.permute.xlu2 %3382 }
 0x253   : > { %v3385_v28 = vunpack.i.h.bf16 %v3383_v36  ;;  %v3384_v37 = vunpack.i.l.bf16 %v3383_v36  ;;  %v3353_v34 = vpop.permute.xlu0 %3352 }
 0x254   : > { %v3354_v43 = vunpack.i.l.bf16 %v3353_v34  ;;  %v3355_v46 = vunpack.i.h.bf16 %v3353_v34 }
 0x255   : > { %v1400_v42 = vsel %vm1373_vm6, %v4078_v60, %v3384_v37  ;;  %v1401_v38 = vsel %vm1373_vm6, %v4093_v10, %v3385_v28  ;;  %v1423_v10 = vpack.c.bf16 %v1188_v16, %v4139_v57 }
 0x256   : > { %v1434_v39 = vpack.c.bf16 %v1401_v38, %v1400_v42  ;;  %v1410_v49 = vsel %vm1388_vm7, %v3345_v41, %v3354_v43 }
 0x25a   : > { %1995 = vmatmul.bf16.gmra.mxu0 %v1434_v39  ;;  %v1309_v54 = vpop.permute.xlu2 %1308 }
 0x25b   : > { %v3348_v45 = vpop.permute.xlu1 %3347  ;;  %v1402_v56 = vsel %vm1373_vm6, %v4111_v26, %v1309_v54 }
 0x25c   : > { %v3349_v47 = vunpack.i.l.bf16 %v3348_v45  ;;  %v1441_v59 = vpack.c.bf16 %v1402_v56, %v1402_v56  ;;  %v3350_v35 = vunpack.i.h.bf16 %v3348_v45 }
 0x25e   : > { %v1404_v50 = vsel %vm474_vm3, %v3360_v44, %v3349_v47  ;;  %v1411_v51 = vsel %vm1388_vm7, %v3349_v47, %v3355_v46  ;;  %v1201_v44 = vpop.f32.mrf.mxu0  ;;  %v1405_v8 = vsel %vm474_vm3, %v3369_v22, %v3350_v35 }
 0x25f   : > { %v1421_v60 = vpack.c.bf16 %v1404_v50, %v1403_v48  ;;  %v1422_v52 = vpack.c.bf16 %v1411_v51, %v1410_v49  ;;  %v1444_v53 = vpack.c.bf16 %v1201_v44, %v1201_v44 }
 0x261   : > { %2013 = vmatmul.bf16.vlgmr.msrb.gmra.mxu1 %v1421_v60  ;;  %2041 = vmatmul.bf16.vlgmr.msrb.gmra.mxu2 %v1422_v52 }
 0x262   : > { %3101 = vmatmul.msk.bf16.vlgmr.msrb.gmra.mxu3 %vm1373_vm6, %v1423_v10 }
 0x263   : > { %v3363_v58 = vpop.permute.xlu0 %3362  ;;  %v1331_v63 = vpop.permute.xlu1 %1330 }
 0x264   : > { %v3365_v61 = vunpack.i.h.bf16 %v3363_v58  ;;  %v3364_v62 = vunpack.i.l.bf16 %v3363_v58  ;;  %v1406_v0 = vsel %vm474_vm3, %v3370_v21, %v1331_v63 }
 0x265   : > { %v1428_v13 = vpack.c.bf16 %v1406_v0, %v1405_v8 }
 0x266   : > { %v1412_v57 = vsel %vm1388_vm7, %v3350_v35, %v3364_v62  ;;  %v1413_v1 = vsel %vm1388_vm7, %v1331_v63, %v3365_v61  ;;  %v1203_v26 = vpop.f32.mrf.mxu0 }
 0x267   : > { %v1429_v2 = vpack.c.bf16 %v1413_v1, %v1412_v57 }
 0x26a   : > { %2000 = vmatmul.bf16.gmra.mxu0 %v1441_v59 }
 0x271   : > { %2018 = vmatmul.bf16.gmra.mxu1 %v1428_v13  ;;  %2046 = vmatmul.bf16.gmra.mxu2 %v1429_v2 }
 0x272   : > { %3102 = vmatmul.msk.bf16.gmra.mxu3 %vm1373_vm6, %v1430_v3 }
 0x273   : > { %v3378_v4 = vpop.permute.xlu0 %3377  ;;  %v3373_v5 = vpop.permute.xlu1 %3372 }
 0x274   : > { %v3380_v6 = vunpack.i.h.bf16 %v3378_v4  ;;  %v3379_v7 = vunpack.i.l.bf16 %v3378_v4  ;;  %v3375_v9 = vunpack.i.h.bf16 %v3373_v5  ;;  %v3374_v12 = vunpack.i.l.bf16 %v3373_v5 }
 0x276   : > { %v1407_v14 = vsel %vm474_vm3, %v3384_v37, %v3374_v12  ;;  %v1408_v15 = vsel %vm474_vm3, %v3385_v28, %v3375_v9  ;;  %v1414_v16 = vsel %vm1388_vm7, %v3374_v12, %v3379_v7  ;;  %v1415_v17 = vsel %vm1388_vm7, %v3375_v9, %v3380_v6 }
 0x277   : > { %v1435_v11 = vpack.c.bf16 %v1408_v15, %v1407_v14  ;;  %v1436_v18 = vpack.c.bf16 %v1415_v17, %v1414_v16 }
 0x27b   : > { %v1365_v19 = vpop.permute.xlu0 %1364  ;;  %v1337_v21 = vpop.permute.xlu1 %1336 }
 0x27c   : > { %v1409_v22 = vsel %vm474_vm3, %v1309_v54, %v1337_v21  ;;  %v1416_v24 = vsel %vm1388_vm7, %v1337_v21, %v1365_v19  ;;  %v4219_v54 = vld [vmem:[%s4495_s5] ss:$0 sm:$0xff] }
 0x27d   : > { %v1442_v25 = vpack.c.bf16 %v1409_v22, %v1409_v22  ;;  %v1443_v27 = vpack.c.bf16 %v1416_v24, %v1416_v24 }
 0x281   : > { %2023 = vmatmul.bf16.gmra.mxu1 %v1435_v11  ;;  %2051 = vmatmul.bf16.gmra.mxu2 %v1436_v18 }
 0x282   : > { %3103 = vmatmul.msk.bf16.gmra.mxu3 %vm1373_vm6, %v1437_v23 }
 0x28d   : > { %v1902_v29 = vpop.f32.mrf.mxu1 }
 0x28e   : > { %v1903_v56 = vadd.f32 %v4219_v54, %v1902_v29 }
 0x291   : > { %2028 = vmatmul.bf16.gmra.mxu1 %v1442_v25  ;;  %2056 = vmatmul.bf16.gmra.mxu2 %v1443_v27 }
 0x292   : > { %3104 = vmatmul.msk.bf16.gmra.mxu3 %vm1373_vm6, %v1444_v53 }
 0x295   : > { %v1904_v30 = vpop.f32.mrf.mxu1 }
 0x296   : > { %v1905_v44 = vadd.f32 %v4219_v54, %v1904_v30 }
 0x29c   : > { %v1930_v31 = vpop.f32.mrf.mxu2  ;;  %v1958_v32 = vpop.f32.mrf.mxu3 }
 0x29d   : > { %v1907_v20 = vpop.f32.mrf.mxu1  ;;  %v1931_v58 = vadd.f32 %v1930_v31, %v1903_v56 }
 0x29e   : > { %v1908_v6 = vadd.f32 %v4219_v54, %v1907_v20 }
 0x29f   : > { %v1959_v63 = vadd.f32 %v1958_v32, %v1931_v58 }
 0x2a4   : > { %v1932_v33 = vpop.f32.mrf.mxu2  ;;  %v1960_v36 = vpop.f32.mrf.mxu3 }
 0x2a5   : > { %v1909_v28 = vpop.f32.mrf.mxu1  ;;  %v1933_v57 = vadd.f32 %v1932_v33, %v1905_v44 }
 0x2a6   : > { %v1910_v22 = vadd.f32 %v4219_v54, %v1909_v28 }
 0x2a7   : > { %v1961_v26 = vadd.f32 %v1960_v36, %v1933_v57 }
 0x2ac   : > { %v1935_v37 = vpop.f32.mrf.mxu2  ;;  %v1963_v34 = vpop.f32.mrf.mxu3 }
 0x2ad   : > { %v4198_v42 = vpop.f32.mrf.mxu1  ;;  %v1936_v12 = vadd.f32 %v1935_v37, %v1908_v6 }
 0x2af   : > { %v1964_v18 = vadd.f32 %v1963_v34, %v1936_v12  ;;  %v1913_v34 = vadd.f32 %v4219_v54, %v4198_v42 }
 0x2b4   : > { %v1937_v40 = vpop.f32.mrf.mxu2  ;;  %v1965_v41 = vpop.f32.mrf.mxu3 }
 0x2b5   : > { %v4200_v38 = vpop.f32.mrf.mxu1  ;;  %v1938_v53 = vadd.f32 %v1937_v40, %v1910_v22 }
 0x2b7   : > { %v1986_v39 = vpop.f32.mrf.mxu0  ;;  %v1966_v33 = vadd.f32 %v1965_v41, %v1938_v53 }
 0x2b8   : > { %v1987_v0 = vadd.f32 %v1986_v39, %v1959_v63 }
 0x2bc   : > { %v4204_v46 = vpop.f32.mrf.mxu2  ;;  %v4206_v47 = vpop.f32.mrf.mxu3 }
 0x2bd   : > { %v4202_v43 = vpop.f32.mrf.mxu1  ;;  %v1941_v40 = vadd.f32 %v4204_v46, %v1913_v34  ;;  %v1915_v46 = vadd.f32 %v4219_v54, %v4200_v38 }
 0x2bf   : > { %v1988_v45 = vpop.f32.mrf.mxu0  ;;  %v1969_v42 = vadd.f32 %v4206_v47, %v1941_v40 }
 0x2c0   : > { %v1989_v7 = vadd.f32 %v1988_v45, %v1961_v26 }
 0x2c4   : > { %v4208_v50 = vpop.f32.mrf.mxu2  ;;  %v4210_v51 = vpop.f32.mrf.mxu3 }
 0x2c5   : > { %v1919_v48 = vpop.f32.mrf.mxu1 }
 0x2c7   : > { %v1991_v49 = vpop.f32.mrf.mxu0 }
 0x2c8   : > { %v1992_v24 = vadd.f32 %v1991_v49, %v1964_v18 }
 0x2cf   : > { %v1993_v60 = vpop.f32.mrf.mxu0 }
 0x2d0   : > { %v1994_v28 = vadd.f32 %v1993_v60, %v1966_v33 }
 0x2d4   : > { %v4212_v52 = vpop.f32.mrf.mxu2  ;;  %v4214_v10 = vpop.f32.mrf.mxu3 }
 0x2d7   : > { %v4221_v55 = vpop.f32.mrf.mxu0 }
 0x2dc   : > { %v1947_v59 = vpop.f32.mrf.mxu2  ;;  %v1975_v61 = vpop.f32.mrf.mxu3 }
 0x2de   : > { %v2014_v62 = vpop.f32.mrf.mxu1 }
 0x2df   : > { %v4224_v35 = vpop.f32.mrf.mxu0  ;;  %v2015_v1 = vadd.f32 %v2014_v62, %v1987_v0 }
 0x2e4   : > { %v2042_v8 = vpop.f32.mrf.mxu2 }
 0x2e5   : > { %v2043_v13 = vadd.f32 %v2042_v8, %v2015_v1  ;;  %v2070_v2 = vpop.f32.mrf.mxu3  ;;  %v1997_v1 = vadd.f32 %v4221_v55, %v1969_v42 }
 0x2e6   : > { %v2016_v3 = vpop.f32.mrf.mxu1 }
 0x2e7   : > { %v4227_v4 = vadd.f32 %v2070_v2, %v2043_v13  ;;  %v4229_v5 = vpop.f32.mrf.mxu0  ;;  %v2017_v14 = vadd.f32 %v2016_v3, %v1989_v7  ;;  %v1943_v3 = vadd.f32 %v4208_v50, %v1915_v46 }
 0x2e9   : > { %v3105_v9 = vmul.f32 -1.442695, %v4227_v4 }
 0x2eb   : > { %3404 = vpow2.f32 %v3105_v9 }
 0x2ec   : > { %v2044_v15 = vpop.f32.mrf.mxu2 }
 0x2ed   : > { %v2045_v16 = vadd.f32 %v2044_v15, %v2017_v14  ;;  %v2072_v17 = vpop.f32.mrf.mxu3 }
 0x2ee   : > { %v2019_v11 = vpop.f32.mrf.mxu1 }
 0x2ef   : > { %v4233_v23 = vadd.f32 %v2072_v17, %v2045_v16  ;;  %v2003_v19 = vpop.f32.mrf.mxu0  ;;  %v2020_v29 = vadd.f32 %v2019_v11, %v1992_v24  ;;  %v1971_v11 = vadd.f32 %v4210_v51, %v1943_v3 }
 0x2f1   : > { %v3405_v21 = vpop.eup %3404  ;;  %v3106_v25 = vmul.f32 -1.442695, %v4233_v23  ;;  %v1999_v24 = vadd.f32 %v4224_v35, %v1971_v11 }
 0x2f2   : > { %v2110_v27 = vadd.f32 1.0, %v3405_v21  ;;  %v1918_v21 = vadd.f32 %v4219_v54, %v4202_v43 }
 0x2f3   : > { %3406 = vpow2.f32 %v3106_v25 }
 0x2f4   : > { %3408 = vrcp.f32 %v2110_v27  ;;  %v2047_v30 = vpop.f32.mrf.mxu2  ;;  %v2126_v63 = vand.u32 2147483647, %v2110_v27  ;;  %v2128_v44 = vand.u32 2147483648, %v2110_v27  ;;  %vm2122_vm9 = vweird.f32 %v2110_v27 }
 0x2f5   : > { %v2048_v31 = vadd.f32 %v2047_v30, %v2020_v29  ;;  %v2075_v32 = vpop.f32.mrf.mxu3  ;;  %v1946_v29 = vadd.f32 %v4212_v52, %v1918_v21 }
 0x2f6   : > { %v2021_v20 = vpop.f32.mrf.mxu1  ;;  %vm2127_vm11 = vcmp.eq.f32.partialorder %v2126_v63, 8.507059e+37  ;;  %v2129_v47 = vor.u32 1.1754944e-38, %v2128_v44 }
 0x2f7   : > { %v4237_v36 = vadd.f32 %v2075_v32, %v2048_v31  ;;  %v2022_v49 = vadd.f32 %v2021_v20, %v1994_v28 }
 0x2f9   : > { %v3407_v37 = vpop.eup %3406  ;;  %v3107_v39 = vmul.f32 -1.442695, %v4237_v36 }
 0x2fa   : > { %v3409_v45 = vpop.eup %3408  ;;  %v2111_v48 = vadd.f32 1.0, %v3407_v37 }
 0x2fb   : > { %3410 = vpow2.f32 %v3107_v39  ;;  %v2118_v56 = vmul.f32 %v3409_v45, %v2110_v27  ;;  %vm2123_vm8 = vweird.f32 %v3409_v45  ;;  %v1974_v39 = vadd.f32 %v4214_v10, %v1946_v29 }
 0x2fc   : > { %3412 = vrcp.f32 %v2111_v48  ;;  %v2049_v58 = vpop.f32.mrf.mxu2  ;;  %vm2124_vm10 = vmor %vm2122_vm9, %vm2123_vm8  ;;  %v2141_v50 = vand.u32 2147483647, %v2111_v48  ;;  %v2143_v17 = vand.u32 2147483648, %v2111_v48  ;;  %vm2137_vm13 = vweird.f32 %v2111_v48 }
 0x2fd   : > { %v2050_v59 = vadd.f32 %v2049_v58, %v2022_v49  ;;  %v2077_v41 = vpop.f32.mrf.mxu3  ;;  %v2119_v61 = vsub.f32 1.0, %v2118_v56  ;;  %v2002_v49 = vadd.f32 %v4229_v5, %v1974_v39 }
 0x2fe   : > { %v2024_v62 = vpop.f32.mrf.mxu1  ;;  %vm2142_vm15 = vcmp.eq.f32.partialorder %v2141_v50, 8.507059e+37  ;;  %v2144_v51 = vor.u32 1.1754944e-38, %v2143_v17 }
 0x2ff   : > { %v4244_v60 = vadd.f32 %v2077_v41, %v2050_v59  ;;  %v2120_v0 = vmul.f32 %v3409_v45, %v2119_v61  ;;  %v2025_v6 = vadd.f32 %v2024_v62, %v1997_v1 }
 0x301   : > { %v3411_v57 = vpop.eup %3410  ;;  %v3108_v8 = vmul.f32 -1.442695, %v4244_v60  ;;  %v2121_v13 = vadd.f32 %v3409_v45, %v2120_v0 }
 0x302   : > { %v3413_v2 = vpop.eup %3412  ;;  %v2112_v26 = vadd.f32 1.0, %v3411_v57 }
 0x303   : > { %3414 = vpow2.f32 %v3108_v8  ;;  %v2125_v7 = vsel %vm2124_vm10, %v3409_v45, %v2121_v13  ;;  %v2133_v9 = vmul.f32 %v3413_v2, %v2111_v48  ;;  %vm2138_vm12 = vweird.f32 %v3413_v2 }
 0x304   : > { %3416 = vrcp.f32 %v2112_v26  ;;  %v2052_v38 = vpop.f32.mrf.mxu2  ;;  %v4251_v12 = vsel %vm2127_vm11, %v2129_v47, %v2125_v7  ;;  %vm2139_vm14 = vmor %vm2137_vm13, %vm2138_vm12  ;;  %v2156_v52 = vand.u32 2147483647, %v2112_v26  ;;  %v2158_v28 = vand.u32 2147483648, %v2112_v26 }
 0x305   : > { %v2053_v55 = vadd.f32 %v2052_v38, %v2025_v6  ;;  %v2080_v14 = vpop.f32.mrf.mxu3  ;;  %2271 = vrot.lane.b32.xlu1 %v4251_v12, %s3591_s22  ;;  %v2134_v15 = vsub.f32 1.0, %v2133_v9  ;;  %vm2152_vm1 = vweird.f32 %v2112_v26 }
 0x306   : > { %v2026_v16 = vpop.f32.mrf.mxu1  ;;  %vm2157_vm3 = vcmp.eq.f32.partialorder %v2156_v52, 8.507059e+37  ;;  %v2159_v61 = vor.u32 1.1754944e-38, %v2158_v28 }
 0x307   : > { %v4256_v18 = vadd.f32 %v2080_v14, %v2053_v55  ;;  %v2135_v19 = vmul.f32 %v3413_v2, %v2134_v15  ;;  %v2027_v31 = vadd.f32 %v2026_v16, %v1999_v24 }
 0x309   : > { %v3415_v22 = vpop.eup %3414  ;;  %v3109_v25 = vmul.f32 -1.442695, %v4256_v18  ;;  %v2136_v27 = vadd.f32 %v3413_v2, %v2135_v19 }
 0x30a   : > { %v3417_v53 = vpop.eup %3416  ;;  %v2113_v30 = vadd.f32 1.0, %v3415_v22 }
 0x30b   : > { %3418 = vpow2.f32 %v3109_v25  ;;  %v2140_v32 = vsel %vm2139_vm14, %v3413_v2, %v2136_v27  ;;  %v2148_v20 = vmul.f32 %v3417_v53, %v2112_v26  ;;  %vm2153_vm0 = vweird.f32 %v3417_v53 }
 0x30c   : > { %3420 = vrcp.f32 %v2113_v30  ;;  %v2054_v43 = vpop.f32.mrf.mxu2  ;;  %v4263_v54 = vsel %vm2142_vm15, %v2144_v51, %v2140_v32  ;;  %vm2154_vm2 = vmor %vm2152_vm1, %vm2153_vm0  ;;  %v2173_v1 = vand.u32 2147483648, %v2113_v30  ;;  %v2171_v2 = vand.u32 2147483647, %v2113_v30 }
 0x30d   : > { %v2055_v35 = vadd.f32 %v2054_v43, %v2027_v31  ;;  %v2082_v33 = vpop.f32.mrf.mxu3  ;;  %2273 = vrot.lane.b32.xlu0 %v4263_v54, %s3591_s22  ;;  %v2149_v37 = vsub.f32 1.0, %v2148_v20  ;;  %vm2167_vm5 = vweird.f32 %v2113_v30 }
 0x30e   : > { %v2029_v34 = vpop.f32.mrf.mxu1  ;;  %v2174_v9 = vor.u32 1.1754944e-38, %v2173_v1  ;;  %vm2172_vm8 = vcmp.eq.f32.partialorder %v2171_v2, 8.507059e+37  ;;  %v2267_v2 = vld [vmem:[#allocation3 + $0x18] sm:$0xff] }
 0x30f   : > { %v4268_v45 = vadd.f32 %v2082_v33, %v2055_v35  ;;  %v2150_v48 = vmul.f32 %v3417_v53, %v2149_v37  ;;  %v2030_v62 = vadd.f32 %v2029_v34, %v2002_v49 }
 0x311   : > { %v3419_v40 = vpop.eup %3418  ;;  %v3110_v56 = vmul.f32 -1.442695, %v4268_v45  ;;  %v2151_v58 = vadd.f32 %v3417_v53, %v2150_v48 }
 0x312   : > { %v3421_v59 = vpop.eup %3420  ;;  %v2114_v41 = vadd.f32 1.0, %v3419_v40 }
 0x313   : > { %3422 = vpow2.f32 %v3110_v56  ;;  %v2155_v63 = vsel %vm2154_vm2, %v3417_v53, %v2151_v58  ;;  %v2163_v10 = vmul.f32 %v3421_v59, %v2113_v30  ;;  %vm2168_vm4 = vweird.f32 %v3421_v59 }
 0x314   : > { %3424 = vrcp.f32 %v2114_v41  ;;  %v2057_v44 = vpop.f32.mrf.mxu2  ;;  %v4272_v42 = vsel %vm2157_vm3, %v2159_v61, %v2155_v63  ;;  %vm2169_vm6 = vmor %vm2167_vm5, %vm2168_vm4  ;;  %v2188_v17 = vand.u32 2147483648, %v2114_v41  ;;  %v2186_v19 = vand.u32 2147483647, %v2114_v41  ;;  %v2264_v63 = vld [vmem:[#allocation3] sm:$0xff] }
 0x315   : > { %v2058_v0 = vadd.f32 %v2057_v44, %v2030_v62  ;;  %v2085_v46 = vpop.f32.mrf.mxu3  ;;  %2275 = vrot.lane.b32.xlu2 %v4272_v42, %s3591_s22  ;;  %v2164_v5 = vsub.f32 1.0, %v2163_v10  ;;  %vm2182_vm10 = vweird.f32 %v2114_v41  ;;  %vm2410_vm5 = vcmask 253952  }
 0x316   : > { %v2031_v57 = vpop.f32.mrf.mxu1  ;;  %v2189_v27 = vor.u32 1.1754944e-38, %v2188_v17  ;;  %vm2187_vm12 = vcmp.eq.f32.partialorder %v2186_v19, 8.507059e+37 }
 0x317   : > { %v4276_v8 = vadd.f32 %v2085_v46, %v2058_v0  ;;  %v2165_v13 = vmul.f32 %v3421_v59, %v2164_v5  ;;  %v2265_v0 = vld [vmem:[#allocation3 + $0x8] sm:$0xff] }
 0x318   : > { %v2269_v57 = vld [vmem:[#allocation3 + $0x28] sm:$0xff] }
 0x319   : > { %v3423_v3 = vpop.eup %3422  ;;  %v3111_v26 = vmul.f32 -1.442695, %v4276_v8  ;;  %v2166_v47 = vadd.f32 %v3421_v59, %v2165_v13 }
 0x31a   : > { %v3425_v6 = vpop.eup %3424  ;;  %v2115_v7 = vadd.f32 1.0, %v3423_v3 }
 0x31b   : > { %3426 = vpow2.f32 %v3111_v26  ;;  %v2170_v38 = vsel %vm2169_vm6, %v3421_v59, %v2166_v47  ;;  %v2178_v55 = vmul.f32 %v3425_v6, %v2114_v41  ;;  %vm2183_vm9 = vweird.f32 %v3425_v6  ;;  %v2266_v41 = vld [vmem:[#allocation3 + $0x10] sm:$0xff]  ;;  %v2268_v47 = vld [vmem:[#allocation3 + $0x20] sm:$0xff] }
 0x31c   : > { %3428 = vrcp.f32 %v2115_v7  ;;  %v2059_v14 = vpop.f32.mrf.mxu2  ;;  %v4279_v15 = vsel %vm2172_vm8, %v2174_v9, %v2170_v38  ;;  %vm2184_vm11 = vmor %vm2182_vm10, %vm2183_vm9  ;;  %v2203_v31 = vand.u32 2147483648, %v2115_v7  ;;  %v2201_v20 = vand.u32 2147483647, %v2115_v7  ;;  %v2270_v9 = vld [vmem:[#allocation3 + $0x30] sm:$0x1] }
 0x31d   : > { %v2087_v16 = vpop.f32.mrf.mxu3  ;;  %2277 = vrot.lane.b32.xlu1 %v4279_v15, %s3591_s22  ;;  %v2179_v50 = vsub.f32 1.0, %v2178_v55  ;;  %vm2197_vm14 = vweird.f32 %v2115_v7 }
 0x31e   : > { %v2204_v33 = vor.u32 1.1754944e-38, %v2203_v31  ;;  %vm2202_vm0 = vcmp.eq.f32.partialorder %v2201_v20, 8.507059e+37 }
 0x31f   : > { %v2180_v11 = vmul.f32 %v3425_v6, %v2179_v50 }
 0x321   : > { %v3427_v21 = vpop.eup %3426  ;;  %v2181_v22 = vadd.f32 %v3425_v6, %v2180_v11 }
 0x322   : > { %v3429_v24 = vpop.eup %3428  ;;  %v2116_v25 = vadd.f32 1.0, %v3427_v21 }
 0x323   : > { %v2185_v53 = vsel %vm2184_vm11, %v3425_v6, %v2181_v22  ;;  %v2193_v29 = vmul.f32 %v3429_v24, %v2115_v7  ;;  %vm2198_vm13 = vweird.f32 %v3429_v24 }
 0x324   : > { %3430 = vrcp.f32 %v2116_v25  ;;  %v4283_v30 = vsel %vm2187_vm12, %v2189_v27, %v2185_v53  ;;  %vm2199_vm15 = vmor %vm2197_vm14, %vm2198_vm13  ;;  %v2218_v39 = vand.u32 2147483648, %v2116_v25  ;;  %v2216_v40 = vand.u32 2147483647, %v2116_v25 }
 0x325   : > { %2279 = vrot.lane.b32.xlu0 %v4283_v30, %s3591_s22  ;;  %v2194_v51 = vsub.f32 1.0, %v2193_v29  ;;  %vm2212_vm2 = vweird.f32 %v2116_v25  ;;  %3432 = vtanh.f32 %v4227_v4 }
 0x326   : > { %v2219_v56 = vor.u32 1.1754944e-38, %v2218_v39  ;;  %vm2217_vm4 = vcmp.eq.f32.partialorder %v2216_v40, 8.507059e+37 }
 0x327   : > { %v2195_v32 = vmul.f32 %v3429_v24, %v2194_v51 }
 0x329   : > { %v2196_v43 = vadd.f32 %v3429_v24, %v2195_v32 }
 0x32a   : > { %v3431_v35 = vpop.eup %3430 }
 0x32b   : > { %v2200_v37 = vsel %vm2199_vm15, %v3429_v24, %v2196_v43  ;;  %v2208_v34 = vmul.f32 %v3431_v35, %v2116_v25  ;;  %vm2213_vm1 = vweird.f32 %v3431_v35  ;;  %v3433_v17 = vpop.eup %3432 }
 0x32c   : > { %v4287_v52 = vsel %vm2202_vm0, %v2204_v33, %v2200_v37  ;;  %vm2214_vm3 = vmor %vm2212_vm2, %vm2213_vm1 }
 0x32d   : > { %2281 = vrot.lane.b32.xlu2 %v4287_v52, %s3591_s22  ;;  %2236 = vrot.lane.b32.xlu0 %v4251_v12, %s3589_s30  ;;  %v2209_v28 = vsub.f32 1.0, %v2208_v34 }
 0x32f   : > { %v2210_v48 = vmul.f32 %v3431_v35, %v2209_v28 }
 0x331   : > { %v2211_v49 = vadd.f32 %v3431_v35, %v2210_v48 }
 0x333   : > { %v2215_v58 = vsel %vm2214_vm3, %v3431_v35, %v2211_v49 }
 0x334   : > { %v4293_v59 = vsel %vm2217_vm4, %v2219_v56, %v2215_v58 }
 0x335   : > { %2238 = vrot.lane.b32.xlu2 %v4263_v54, %s3589_s30  ;;  %2242 = vrot.lane.b32.xlu0 %v4279_v15, %s3589_s30 }
 0x336   : > { %2283 = vrot.lane.b32.xlu1 %v4293_v59, %s3591_s22 }
 0x33d   : > { %2244 = vrot.lane.b32.xlu2 %v4283_v30, %s3589_s30  ;;  %2248 = vrot.lane.b32.xlu0 %v4293_v59, %s3589_s30 }
 0x33e   : > { %2240 = vrot.lane.b32.xlu1 %v4272_v42, %s3589_s30 }
 0x346   : > { %2246 = vrot.lane.b32.xlu1 %v4287_v52, %s3589_s30 }
 0x36f   : > { %v2276_v61 = vpop.permute.xlu2 %2275 }
 0x370   : > { %v2294_v62 = vmul.f32 %v2276_v61, %v2266_v41 }
 0x372   : > { %2310 = vrot.lane.b32.xlu0 %v2294_v62, %s3589_s30 }
 0x377   : > { %v2272_v10 = vpop.permute.xlu1 %2271 }
 0x378   : > { %v2292_v44 = vmul.f32 %v2272_v10, %v2264_v63 }
 0x37a   : > { %2306 = vrot.lane.b32.xlu2 %v2292_v44, %s3589_s30 }
 0x37f   : > { %v2274_v46 = vpop.permute.xlu0 %2273 }
 0x380   : > { %v2293_v5 = vmul.f32 %v2274_v46, %v2265_v0 }
 0x382   : > { %2308 = vrot.lane.b32.xlu1 %v2293_v5, %s3589_s30 }
 0x387   : > { %v2282_v1 = vpop.permute.xlu2 %2281 }
 0x388   : > { %v2297_v13 = vmul.f32 %v2282_v1, %v2269_v57 }
 0x38a   : > { %2316 = vrot.lane.b32.xlu0 %v2297_v13, %s3589_s30 }
 0x38f   : > { %v2278_v3 = vpop.permute.xlu1 %2277  ;;  %v2239_v14 = vpop.permute.xlu2 %2238 }
 0x390   : > { %v2295_v26 = vmul.f32 %v2278_v3, %v2267_v2 }
 0x392   : > { %2312 = vrot.lane.b32.xlu2 %v2295_v26, %s3589_s30 }
 0x397   : > { %v2280_v6 = vpop.permute.xlu0 %2279  ;;  %v2245_v50 = vpop.permute.xlu2 %2244 }
 0x398   : > { %v2296_v7 = vmul.f32 %v2280_v6, %v2268_v47 }
 0x39a   : > { %2314 = vrot.lane.b32.xlu1 %v2296_v7, %s3589_s30 }
 0x39f   : > { %v2237_v16 = vpop.permute.xlu0 %2236 }
 0x3a0   : > { %v2257_v19 = vmul.f32 %v3433_v17, %v2237_v16 }
 0x3a7   : > { %v2243_v11 = vpop.permute.xlu0 %2242 }
 0x3a8   : > { %v2284_v38 = vpop.permute.xlu1 %2283 }
 0x3a9   : > { %v2298_v55 = vmul.f32 %v2284_v38, %v2270_v9 }
 0x3ab   : > { %2318 = vrot.lane.b32.xlu2 %v2298_v55, %s3589_s30 }
 0x3af   : > { %v2249_v24 = vpop.permute.xlu0 %2248 }
 0x3b0   : > { %v2241_v27 = vpop.permute.xlu1 %2240 }
 0x3b8   : > { %v2247_v20 = vpop.permute.xlu1 %2246 }
 0x3d4   : > { %v2307_v21 = vpop.permute.xlu2 %2306 }
 0x3d5   : > { %v4317_v22 = vadd.f32 %v2307_v21, %v2257_v19 }
 0x3d7   : > { %3434 = vtanh.f32 %v4317_v22 }
 0x3d8   : > { %3436 = vtanh.f32 %v4237_v36 }
 0x3d9   : > { %3438 = vtanh.f32 %v4244_v60 }
 0x3dd   : > { %v3435_v25 = vpop.eup %3434 }
 0x3de   : > { %2348 = vrot.lane.b32.xlu1 %v3435_v25, %s3592_s17  ;;  %v3437_v53 = vpop.eup %3436 }
 0x3df   : > { %v2259_v29 = vmul.f32 %v3437_v53, %v2241_v27  ;;  %v3439_v31 = vpop.eup %3438 }
 0x3e0   : > { %v2260_v32 = vmul.f32 %v3439_v31, %v2243_v11 }
 0x3e4   : > { %v2311_v4 = vpop.permute.xlu0 %2310 }
 0x3e5   : > { %v4323_v51 = vadd.f32 %v2311_v4, %v2259_v29 }
 0x3e7   : > { %3440 = vtanh.f32 %v4323_v51 }
 0x3e8   : > { %3442 = vtanh.f32 %v4233_v23 }
 0x3ec   : > { %v2313_v36 = vpop.permute.xlu2 %2312 }
 0x3ed   : > { %v3441_v43 = vpop.eup %3440  ;;  %v4327_v35 = vadd.f32 %v2313_v36, %v2260_v32 }
 0x3ee   : > { %2352 = vrot.lane.b32.xlu2 %v3441_v43, %s3592_s17  ;;  %v3443_v33 = vpop.eup %3442 }
 0x3ef   : > { %3444 = vtanh.f32 %v4327_v35  ;;  %v2258_v60 = vmul.f32 %v3443_v33, %v2239_v14 }
 0x3f0   : > { %3446 = vtanh.f32 %v4268_v45 }
 0x3f4   : > { %v2309_v37 = vpop.permute.xlu1 %2308 }
 0x3f5   : > { %v3445_v34 = vpop.eup %3444  ;;  %v4332_v28 = vadd.f32 %v2309_v37, %v2258_v60 }
 0x3f6   : > { %2354 = vrot.lane.b32.xlu1 %v3445_v34, %s3592_s17  ;;  %v3447_v23 = vpop.eup %3446 }
 0x3f7   : > { %3448 = vtanh.f32 %v4332_v28  ;;  %v2262_v39 = vmul.f32 %v3447_v23, %v2247_v20 }
 0x3f8   : > { %3450 = vtanh.f32 %v4276_v8 }
 0x3fc   : > { %v2317_v48 = vpop.permute.xlu0 %2316 }
 0x3fd   : > { %v3449_v40 = vpop.eup %3448  ;;  %v4337_v49 = vadd.f32 %v2317_v48, %v2262_v39 }
 0x3fe   : > { %2350 = vrot.lane.b32.xlu0 %v3449_v40, %s3592_s17  ;;  %v3451_v45 = vpop.eup %3450 }
 0x3ff   : > { %3452 = vtanh.f32 %v4337_v49  ;;  %v2263_v56 = vmul.f32 %v3451_v45, %v2249_v24 }
 0x400   : > { %3454 = vtanh.f32 %v4256_v18 }
 0x405   : > { %v3453_v58 = vpop.eup %3452  ;;  %v2319_v41 = vpop.permute.xlu2 %2318 }
 0x406   : > { %v4342_v61 = vadd.f32 %v2319_v41, %v2263_v56  ;;  %2358 = vrot.lane.b32.xlu2 %v3453_v58, %s3592_s17  ;;  %v3455_v62 = vpop.eup %3454 }
 0x407   : > { %v2261_v8 = vmul.f32 %v3455_v62, %v2245_v50 }
 0x408   : > { %3456 = vtanh.f32 %v4342_v61 }
 0x40c   : > { %v2315_v63 = vpop.permute.xlu1 %2314 }
 0x40d   : > { %v4346_v10 = vadd.f32 %v2315_v63, %v2261_v8 }
 0x40e   : > { %v3457_v44 = vpop.eup %3456  ;;  %2419 = vrot.lane.b32.xlu2 %v4317_v22, %s3589_s30 }
 0x40f   : > { %3458 = vtanh.f32 %v4346_v10  ;;  %2360 = vrot.lane.b32.xlu1 %v3457_v44, %s3592_s17 }
 0x415   : > { %v3459_v18 = vpop.eup %3458 }
 0x416   : > { %2425 = vrot.lane.b32.xlu2 %v4327_v35, %s3589_s30  ;;  %2356 = vrot.lane.b32.xlu0 %v3459_v18, %s3592_s17 }
 0x417   : > { %2421 = vrot.lane.b32.xlu1 %v4332_v28, %s3589_s30 }
 0x41e   : > { %2423 = vrot.lane.b32.xlu0 %v4323_v51, %s3589_s30 }
 0x448   : > { %v2353_v0 = vpop.permute.xlu2 %2352 }
 0x449   : > { %v2371_v46 = vmul.f32 %v2353_v0, %v4272_v42 }
 0x44b   : > { %2387 = vrot.lane.b32.xlu1 %v2371_v46, %s3592_s17 }
 0x450   : > { %v2349_v5 = vpop.permute.xlu1 %2348 }
 0x451   : > { %v2369_v57 = vmul.f32 %v2349_v5, %v4251_v12 }
 0x453   : > { %2383 = vrot.lane.b32.xlu0 %v2369_v57, %s3592_s17 }
 0x460   : > { %v2359_v1 = vpop.permute.xlu2 %2358 }
 0x461   : > { %v2374_v13 = vmul.f32 %v2359_v1, %v4287_v52 }
 0x463   : > { %2393 = vrot.lane.b32.xlu1 %v2374_v13, %s3592_s17 }
 0x468   : > { %v2420_v2 = vpop.permute.xlu2 %2419  ;;  %v2355_v3 = vpop.permute.xlu1 %2354 }
 0x469   : > { %2440 = vst.msk [vmem:[#allocation3] sm:$0xff] %vm1388_vm7, %v2420_v2  ;;  %v2372_v26 = vmul.f32 %v2355_v3, %v4279_v15 }
 0x46b   : > { %2427 = vrot.lane.b32.xlu1 %v4346_v10, %s3589_s30  ;;  %2389 = vrot.lane.b32.xlu0 %v2372_v26, %s3592_s17 }
 0x470   : > { %v2426_v42 = vpop.permute.xlu2 %2425  ;;  %v2351_v12 = vpop.permute.xlu0 %2350 }
 0x471   : > { %2443 = vst.msk [vmem:[#allocation3 + $0x18] sm:$0xff] %vm1388_vm7, %v2426_v42  ;;  %v2370_v47 = vmul.f32 %v2351_v12, %v4263_v54 }
 0x473   : > { %2385 = vrot.lane.b32.xlu2 %v2370_v47, %s3592_s17 }
 0x481   : > { %v2361_v52 = vpop.permute.xlu1 %2360 }
 0x482   : > { %v2375_v6 = vmul.f32 %v2361_v52, %v4293_v59 }
 0x484   : > { %2395 = vrot.lane.b32.xlu0 %v2375_v6, %s3592_s17 }
 0x488   : > { %v2357_v7 = vpop.permute.xlu0 %2356 }
 0x489   : > { %v2373_v15 = vmul.f32 %v2357_v7, %v4283_v30  ;;  %v2422_v9 = vpop.permute.xlu1 %2421 }
 0x48a   : > { %2441 = vst.msk [vmem:[#allocation3 + $0x8] sm:$0xff] %vm1388_vm7, %v2422_v9 }
 0x48b   : > { %2391 = vrot.lane.b32.xlu2 %v2373_v15, %s3592_s17 }
 0x48c   : > { %2429 = vrot.lane.b32.xlu0 %v4337_v49, %s3589_s30 }
 0x490   : > { %v2424_v38 = vpop.permute.xlu0 %2423 }
 0x491   : > { %2442 = vst.msk [vmem:[#allocation3 + $0x10] sm:$0xff] %vm1388_vm7, %v2424_v38 }
 0x493   : > { %2431 = vrot.lane.b32.xlu2 %v4342_v61, %s3589_s30 }
 0x4bd   : > { %v2388_v54 = vpop.permute.xlu1 %2387 }
 0x4be   : > { %2406 = vst.msk [vmem:[#allocation2 + $0x10] sm:$0xff] %vm1388_vm7, %v2388_v54 }
 0x4c5   : > { %v2384_v59 = vpop.permute.xlu0 %2383 }
 0x4c6   : > { %2404 = vst.msk [vmem:[#allocation2] sm:$0xff] %vm1388_vm7, %v2384_v59 }
 0x4cd   : > { %v2386_v30 = vpop.permute.xlu2 %2385 }
 0x4ce   : > { %2405 = vst.msk [vmem:[#allocation2 + $0x8] sm:$0xff] %vm1388_vm7, %v2386_v30 }
 0x4d5   : > { %v2394_v55 = vpop.permute.xlu1 %2393 }
 0x4d6   : > { %2409 = vst.msk [vmem:[#allocation2 + $0x28] sm:$0xff] %vm1388_vm7, %v2394_v55 }
 0x4dd   : > { %v2390_v14 = vpop.permute.xlu0 %2389  ;;  %v2428_v16 = vpop.permute.xlu1 %2427 }
 0x4de   : > { %2407 = vst.msk [vmem:[#allocation2 + $0x18] sm:$0xff] %vm1388_vm7, %v2390_v14 }
 0x4df   : > { %2444 = vst.msk [vmem:[#allocation3 + $0x20] sm:$0xff] %vm1388_vm7, %v2428_v16 }
 0x4e5   : > { %v2392_v50 = vpop.permute.xlu2 %2391 }
 0x4e6   : > { %2408 = vst.msk [vmem:[#allocation2 + $0x20] sm:$0xff] %vm1388_vm7, %v2392_v50 }
 0x4ed   : > { %v2432_v17 = vpop.permute.xlu2 %2431 }
 0x4ee   : > { %2446 = vst.msk [vmem:[#allocation3 + $0x30] sm:$0x1] %vm2410_vm5, %v2432_v17 }
 0x4f6   : > { %v2396_v11 = vpop.permute.xlu0 %2395 }
 0x4f7   : > { %2411 = vst.msk [vmem:[#allocation2 + $0x30] sm:$0x1] %vm2410_vm5, %v2396_v11 }
 0x4fb   : > { %2450 = sbr.rel (%p3112_p1) target bundleno = 1552 (0x610), region = 60 }
 0x4fe   : > { %v2430_v19 = vpop.permute.xlu0 %2429 }
 0x4ff   : > { %2445 = vst.msk [vmem:[#allocation3 + $0x28] sm:$0xff] %vm1388_vm7, %v2430_v19 }
 0x500   : > { %vm2451_vm6 = vcmask 785920   ;;  %v2481_v21 = vld [vmem:[%s4496_s6 + $0x18] sm:$0xff]  ;;  %v2480_v24 = vld [vmem:[%s4496_s6 + $0x10] sm:$0xff]  ;;  %v2479_v4 = vld [vmem:[%s4496_s6 + $0x8] sm:$0xff]  ;;  %vm2463_vm8 = vcmask 778752   ;;  %vm2505_vm9 = vcmask 73728  }
 0x501   : > { %v2452_v25 = vsel %vm2451_vm6, %v4317_v22, 0.0  ;;  %v2453_v27 = vsel %vm2451_vm6, %v4332_v28, 0.0  ;;  %v2455_v53 = vsel %vm2451_vm6, %v4323_v51, 0.0  ;;  %2497 = vmatpush.msra.mxu0 %v2481_v21  ;;  %v2457_v31 = vsel %vm2451_vm6, %v4327_v35, 0.0  ;;  %v2478_v40 = vld [vmem:[%s4496_s6] sm:$0xff] }
 0x502   : > { %v2454_v29 = vadd.f32 %v2453_v27, %v2452_v25  ;;  %v2459_v22 = vsel %vm2451_vm6, %v4346_v10, 0.0  ;;  %v2461_v51 = vsel %vm2451_vm6, %v4337_v49, 0.0  ;;  %v2464_v43 = vsel %vm2463_vm8, %v4342_v61, 0.0  ;;  %v2482_v45 = vld [vmem:[%s4497_s7] sm:$0x1] }
 0x503   : > { %2498 = vmatpush.msra.mxu0 %v2480_v24 }
 0x504   : > { %v2456_v32 = vadd.f32 %v2455_v53, %v2454_v29 }
 0x505   : > { %2499 = vmatpush.msra.mxu0 %v2479_v4 }
 0x506   : > { %v2458_v20 = vadd.f32 %v2457_v31, %v2456_v32 }
 0x507   : > { %2500 = vmatpush.msra.mxu0 %v2478_v40 }
 0x508   : > { %v2460_v36 = vadd.f32 %v2459_v22, %v2458_v20 }
 0x50a   : > { %v2462_v33 = vadd.f32 %v2461_v51, %v2460_v36 }
 0x50c   : > { %v2465_v60 = vadd.f32 %v2464_v43, %v2462_v33 }
 0x50e   : > { %v2466_v37 = vrot.slane %v2465_v60, 4 }
 0x510   : > { %v2467_v34 = vadd.f32 %v2466_v37, %v2465_v60 }
 0x512   : > { %v2468_v35 = vrot.slane %v2467_v34, 2 }
 0x514   : > { %v2469_v28 = vadd.f32 %v2468_v35, %v2467_v34 }
 0x516   : > { %v2470_v23 = vrot.slane %v2469_v28, 1 }
 0x518   : > { %v2471_v39 = vadd.f32 %v2470_v23, %v2469_v28 }
 0x51a   : > { %v2472_v48 = vmul.f32 0.020408163, %v2471_v39 }
 0x51c   : > { %2474 = vrot.lane.b32.xlu0 %v2472_v48, %s3593_s18 }
 0x58e   : > { %v2475_v49 = vpop.permute.xlu0 %2474 }
 0x58f   : > { %2477 = vst.msk [vmem:[%s396_s28] sm:$0x1] %vm2410_vm5, %v2475_v49  ;;  %3113 = vmatmul.msk.f32.vlgmr.msra.gmra.mxu0 %vm1388_vm7, %v2475_v49 }
 0x60c   : > { %v2502_v56 = vpop.f32.mrf.mxu0 }
 0x60d   : > { %v2503_v58 = vadd.f32 %v2502_v56, %v2482_v45 }
 0x60f   : > { %2506 = vst.msk [vmem:[%s402_s16] sm:$0x1] %vm2505_vm9, %v2503_v58 }
 0x610 PF: > { %s2520_s15 = scalar_lea.hbm %s4498_s8, %s3574_s13  ;;  %s2522_s19 = sshll.u32 %s396_s28, 4  ;;  %s2523_s19 = int_to_ptr.vmem [resolvable:$true] %s2522_s19 }
 0x611   : > { %s2524_s20 = sshll.u32 %s2520_s15, 4  ;;  %s2508_s30 = scalar_lea.sflag [#allocation5], %s3714_s26  ;;  %s2525_s20 = int_to_ptr.hbm [resolvable:$true] %s2524_s20 }
 0x612   : > { %s3474_s22 = sshra.s32 %s2525_s20, 4  ;;  %s3480_s29 = scalar_lea.hbm %s4498_s8, 2  ;;  %s3475_s22 = int_to_ptr.hbm [resolvable:$true] %s3474_s22 }
 0x613   : > { %s3476_s17 = scalar_lea.hbm %s3475_s22, 1  ;;  %p3481_p6 = scmp.lt.s32.totalorder %s3475_s22, %s4498_s8 }
 0x614   : > { %p3477_p2 = scmp.ne.s32.totalorder %s3475_s22, %s3476_s17  ;;  %p3482_p7 = scmp.lt.s32.totalorder %s3480_s29, %s3476_s17 }
 0x616   : > { %p3478_p4 = pnand %p3477_p2, %p3693_p3  ;;  %p3483_p8 = por %p3482_p7, %p3481_p6 }
 0x618   : > { %p3479_p5 = pneg %p3478_p4 }
 0x61a   : > { %p3484_p10 = pnand %p3483_p8, %p3479_p5 }
 0x61c   : > { %3487 = shalt.err (!%p3484_p10)
}
 0x61d   : > { %3199 = dma.vmem_to_hbm [thread:$0]  (%p3693_p3), %s2523_s19, 16, %s2525_s20, %s2508_s30  }
 0x61e   : > { %s2533_s27 = scalar_lea.hbm %s4499_s9, %s3574_s13  ;;  %s2535_s10 = sshll.u32 %s402_s16, 4  ;;  %s2536_s10 = int_to_ptr.vmem [resolvable:$true] %s2535_s10 }
 0x61f   : > { %s2537_s11 = sshll.u32 %s2533_s27, 4  ;;  %s2512_s14 = scalar_lea.sflag [#allocation7], %s3714_s26  ;;  %s2538_s11 = int_to_ptr.hbm [resolvable:$true] %s2537_s11 }
 0x620   : > { %s3502_s15 = sshra.s32 %s2538_s11, 4  ;;  %s3508_s19 = scalar_lea.hbm %s4499_s9, 2  ;;  %s3503_s15 = int_to_ptr.hbm [resolvable:$true] %s3502_s15 }
 0x621   : > { %s3504_s22 = scalar_lea.hbm %s3503_s15, 1  ;;  %p3509_p0 = scmp.lt.s32.totalorder %s3503_s15, %s4499_s9 }
 0x622   : > { %p3505_p11 = scmp.ne.s32.totalorder %s3503_s15, %s3504_s22  ;;  %p3510_p1 = scmp.lt.s32.totalorder %s3508_s19, %s3504_s22 }
 0x624   : > { %p3506_p12 = pnand %p3505_p11, %p3693_p3  ;;  %p3511_p2 = por %p3510_p1, %p3509_p0 }
 0x626   : > { %p3507_p13 = pneg %p3506_p12 }
 0x628   : > { %p3512_p4 = pnand %p3511_p2, %p3507_p13 }
 0x62a   : > { %3515 = shalt.err (!%p3512_p4)
}
 0x62b   : > { %3200 = dma.vmem_to_hbm [thread:$0]  (%p3693_p3), %s2536_s10, 16, %s2538_s11, %s2512_s14  }
 0x62c PF: > { %s4521_s13 = sld [smem:[#allocation15_spill]] }
 0x62d   : > { %s4522_s16 = sld [smem:[#allocation10_spill]] }
 0x632   : > { %p3210_p5 = scmp.ge.s32.totalorder %s4521_s13, 2 }
 0x633   : > { %s2549_s12 = sand.u32 1, %s4522_s16  }
 0x634   : > { %p3204_p6 = pnand %p3210_p5, %p3703_p9  ;;  %s2550_s29 = scalar_lea.sflag [#allocation5], %s2549_s12 }
 0x636   : > { %p3205_p7 = pneg %p3204_p6 }
 0x638   : > { %3549 = dma.done.wait (%p3205_p7), %s2550_s29, 16  }
 0x639   : > { %3551 = vsyncadd (%p3205_p7), %s2550_s29, 4294967280  ;;  %s2559_s18 = scalar_lea.sflag [#allocation7], %s2549_s12 }
 0x63a   : > { %3553 = dma.done.wait (%p3205_p7), %s2559_s18, 16  }
 0x63b   : > { %3555 = vsyncadd (%p3205_p7), %s2559_s18, 4294967280  ;;  %s26_s16 = sadd.s32 1, %s4521_s13   ;;  %s4524_s30 = sld [smem:[#allocation11_spill]] }
 0x63c   : > { %p23_p8 = scmp.ge.s32.totalorder %s26_s16, 8   ;;  %s4525_s10 = sld [smem:[#allocation12_spill]] }
 0x63d   : > { %s4526_s11 = sld [smem:[#allocation19_spill]] }
 0x63e   : > { %s4527_s12 = sld [smem:[#allocation13_spill]]  ;;  %25 = sbr.rel (!%p23_p8) target bundleno = 7 (0x7), region = 126 }
 0x63f   : > { %s4528_s13 = sld [smem:[#allocation14_spill]] }
 0x640   : > { %s4529_s14 = sld [smem:[#allocation16_spill]] }
 0x641   : > { %s4530_s15 = sld [smem:[#allocation17_spill]] }
 0x643   :  { %2564 = vsyncpa [#allocation5], 1 }
 0x644   :  { %2566 = vsyncpa [#allocation5 + $0x1], 1 }
 0x645   :  { %2567 = vsyncpa [#allocation7], 1 }
 0x646   :  { %2569 = vsyncpa [#allocation7 + $0x1], 1 }

</bundles_post_ra>
